<compile_context>
chip_gen: v5e
topology: v5e:2x2
jax: 0.10.0
libtpu: 0.0.40
codegen_flags: <defaults>
</compile_context>

<pallas_src>
import jax
import jax.numpy as jnp
import numpy as np
from jax import lax
from jax.experimental import pallas as pl
from jax.experimental.pallas import tpu as pltpu

K = 3        # kernel_size
EPS = 1e-5   # BatchNorm2d default eps


# ------------------------- Pallas kernels ------------------------- #

def _conv_stats_kernel(x_ref, w_ref, y_ref, ssum_ref, ssq_ref, xpad_ref):
    """3x3 'same' conv (one image per step) + fused per-channel stats.

    x_ref   : (1, H, W, Cin)      input image (NHWC), mxu dtype
    w_ref   : (Cout, K*K*Cin)     weights, column order (kh, kw, cin)
    y_ref   : (1, Cout, H*W)      conv output, channel-major, f32 (lane-dense)
    ssum_ref: (1, Cout, 1)        per-image per-channel sum        (f32)
    ssq_ref : (1, Cout, 1)        per-image per-channel sum of sq. (f32)
    xpad_ref: (H+2, W+2, Cin)     VMEM scratch holding the haloed image
    """
    _, H, W, Cin = x_ref.shape
    # Build the halo in VMEM (no padded HBM copy).  Zero every step so the
    # border is valid on every core when the grid axis is megacore-sharded.
    xpad_ref[...] = jnp.zeros_like(xpad_ref)
    xpad_ref[1:H + 1, 1:W + 1, :] = x_ref[0]

    # im2col slab: (H*W, K*K*Cin), column order (kh, kw, cin) matching w_ref.
    cols = []
    for kh in range(K):
        for kw in range(K):
            win = xpad_ref[kh:kh + H, kw:kw + W, :]          # (H, W, Cin)
            cols.append(win.reshape(H * W, Cin))
    slab = jnp.concatenate(cols, axis=-1)                    # (H*W, K*K*Cin)

    # Single MXU contraction (A @ B^T), result channel-major so H*W lands on
    # the 128-wide lane axis:  (Cout, KKCin) x (H*W, KKCin)^T -> (Cout, H*W)
    acc_t = lax.dot_general(
        w_ref[...], slab,
        dimension_numbers=(((1,), (1,)), ((), ())),
        preferred_element_type=jnp.float32)

    y_ref[0] = acc_t                                         # unmasked stores

    # Fused BatchNorm statistics (f32 partials, reduced by tiny JAX glue).
    ssum_ref[0] = jnp.sum(acc_t, axis=1, keepdims=True)
    ssq_ref[0] = jnp.sum(acc_t * acc_t, axis=1, keepdims=True)


def _bn_relu_kernel(x_ref, scale_ref, bias_ref, o_ref):
    """Folded BN affine + ReLU, lane-dense channel-major layout.

    x_ref/o_ref: (NB, Cout, H*W) f32; scale_ref/bias_ref: (Cout, 1) f32.
    """
    y = x_ref[...] * scale_ref[...] + bias_ref[...]
    o_ref[...] = jnp.maximum(y, 0.0)


# --------------------------- Wrapper ------------------------------ #

def conv_block_forward(x_nchw, w_oihw, gamma, beta, *, mxu_dtype=jnp.bfloat16):
    """Forward pass of ConvBlock.  Inputs/outputs are NCHW like PyTorch."""
    N, Cin, H, W = x_nchw.shape
    Cout = w_oihw.shape[0]
    HW = H * W

    # NCHW -> NHWC for the conv input (channels on the lane axis).
    # TODO(synk): in a full NHWC pipeline this boundary transpose disappears;
    # the output side already needs no transpose (channel-major + free reshape).
    x = jnp.transpose(x_nchw, (0, 2, 3, 1)).astype(mxu_dtype)

    # (Cout, Cin, K, K) -> (Cout, K, K, Cin) -> (Cout, K*K*Cin); column order
    # (kh, kw, cin) matches the im2col slab built inside the kernel.
    w2d = jnp.transpose(w_oihw, (0, 2, 3, 1)).reshape(Cout, K * K * Cin)
    w2d = w2d.astype(mxu_dtype)

    # ---- conv + fused batch-stat kernel: one image per grid step ----
    # TODO(synk): for large images / v7x (64 MiB VMEM) tile H into strips with
    # a 1-row halo as a second 'parallel' grid axis instead of whole images.
    conv_t, psum, psq = pl.pallas_call(
        _conv_stats_kernel,
        out_shape=(
            jax.ShapeDtypeStruct((N, Cout, HW), jnp.float32),
            jax.ShapeDtypeStruct((N, Cout, 1), jnp.float32),
            jax.ShapeDtypeStruct((N, Cout, 1), jnp.float32),
        ),
        grid=(N,),
        in_specs=[
            pl.BlockSpec((1, H, W, Cin), lambda n: (n, 0, 0, 0)),
            pl.BlockSpec((Cout, K * K * Cin), lambda n: (0, 0)),
        ],
        out_specs=(
            pl.BlockSpec((1, Cout, HW), lambda n: (n, 0, 0)),
            pl.BlockSpec((1, Cout, 1), lambda n: (n, 0, 0)),
            pl.BlockSpec((1, Cout, 1), lambda n: (n, 0, 0)),
        ),
        scratch_shapes=[pltpu.VMEM((H + 2, W + 2, Cin), mxu_dtype)],
        compiler_params=pltpu.CompilerParams(
            dimension_semantics=("parallel",)),
    )(x, w2d)

    # ---- BatchNorm2d (training mode) stats from the fused partials ----
    # Tiny (N, Cout) reductions in f32 -- no XLA pass over the activation.
    cnt = jnp.float32(N * HW)
    mean = jnp.sum(psum[:, :, 0], axis=0) / cnt                  # (Cout,)
    var = jnp.sum(psq[:, :, 0], axis=0) / cnt - mean * mean      # biased var
    inv_std = lax.rsqrt(var + EPS)
    scale_vec = gamma.astype(jnp.float32) * inv_std              # (Cout,)
    bias_vec = beta.astype(jnp.float32) - mean * scale_vec       # (Cout,)
    scale = scale_vec.reshape(Cout, 1)
    bias = bias_vec.reshape(Cout, 1)

    # ---- fused affine + ReLU: lane-dense, whole batch per grid step ----
    # (scale/bias are tiny constant-index blocks: fetched once, broadcast
    #  along lanes inside the kernel; all elementwise math stays in f32.)
    y = pl.pallas_call(
        _bn_relu_kernel,
        out_shape=jax.ShapeDtypeStruct((N, Cout, HW), jnp.float32),
        grid=(1,),
        in_specs=[
            pl.BlockSpec((N, Cout, HW), lambda n: (0, 0, 0)),
            pl.BlockSpec((Cout, 1), lambda n: (0, 0)),
            pl.BlockSpec((Cout, 1), lambda n: (0, 0)),
        ],
        out_specs=pl.BlockSpec((N, Cout, HW), lambda n: (0, 0, 0)),
        compiler_params=pltpu.CompilerParams(
            dimension_semantics=("arbitrary",)),
    )(conv_t, scale, bias)

    # Channel-major (N, Cout, H*W) -> NCHW is a FREE reshape (no transpose).
    return y.reshape(N, Cout, H, W).astype(x_nchw.dtype)


# ----------------------- Pure-JAX reference ----------------------- #

def _reference(x_nchw, w_oihw, gamma, beta):
    conv = lax.conv_general_dilated(
        x_nchw, w_oihw, window_strides=(1, 1), padding=((1, 1), (1, 1)),
        dimension_numbers=("NCHW", "OIHW", "NCHW"))
    mean = jnp.mean(conv, axis=(0, 2, 3), keepdims=True)
    var = jnp.mean((conv - mean) ** 2, axis=(0, 2, 3), keepdims=True)
    xn = (conv - mean) / jnp.sqrt(var + EPS)
    y = xn * gamma.reshape(1, -1, 1, 1) + beta.reshape(1, -1, 1, 1)
    return jnp.maximum(y, 0.0)


# ----------------------------- Main -------------------------------- #

if __name__ == "__main__":
    N, Cin, Cout, H, W = 2, 4, 8, 16, 16

    key = jax.random.PRNGKey(0)
    kx, kwk, kg, kb = jax.random.split(key, 4)

    x = jax.random.normal(kx, (N, Cin, H, W), dtype=jnp.float32)
    # Conv2d weight shape (out_channels, in_channels, 3, 3), bias=False
    w = jax.random.normal(kwk, (Cout, Cin, K, K), dtype=jnp.float32) * 0.1
    # BatchNorm2d affine parameters (shape (out_channels,))
    gamma = 1.0 + 0.1 * jax.random.normal(kg, (Cout,), dtype=jnp.float32)
    beta = 0.1 * jax.random.normal(kb, (Cout,), dtype=jnp.float32)

    ref = jax.block_until_ready(_reference(x, w, gamma, beta))

    # Strict correctness check: f32 MXU operands.
    out_f32 = jax.block_until_ready(
        conv_block_forward(x, w, gamma, beta, mxu_dtype=jnp.float32))
    np.testing.assert_allclose(np.asarray(out_f32), np.asarray(ref),
                               rtol=1e-4, atol=1e-4)

    # Recommended v6e/v7x mode: bf16 MXU operands, f32 accumulation.
    out_bf16 = jax.block_until_ready(conv_block_forward(x, w, gamma, beta))
    np.testing.assert_allclose(np.asarray(out_bf16), np.asarray(ref),
                               rtol=4e-2, atol=4e-2)

    print("KERNEL_OK")
</pallas_src>

<mosaic_0001>
module attributes {stable_mosaic.version = 11 : i64} {
  func.func @_conv_stats_kernel(%arg0: i32, %arg1: memref<1x16x16x4xf32, #tpu.memory_space<vmem>>, %arg2: memref<8x36xf32, #tpu.memory_space<vmem>>, %arg3: memref<1x8x256xf32, #tpu.memory_space<vmem>>, %arg4: memref<1x8x1xf32, #tpu.memory_space<vmem>>, %arg5: memref<1x8x1xf32, #tpu.memory_space<vmem>>, %arg6: memref<18x18x4xf32, #tpu.memory_space<vmem>>) attributes {dimension_semantics = [#tpu.dimension_semantics<parallel>], iteration_bounds = array<i64: 2>, scalar_prefetch = 0 : i64, scratch_operands = 1 : i64, tpu.core_type = #tpu.core_type<tc>, window_params = [{transform_indices = @transform_0, window_bounds = array<i64: 1, 16, 16, 4>}, {pipeline_mode = #tpu.pipeline_mode<synchronous>, transform_indices = @transform_1, window_bounds = array<i64: 8, 36>}, {transform_indices = @transform_2, window_bounds = array<i64: 1, 8, 256>}, {transform_indices = @transform_3, window_bounds = array<i64: 1, 8, 1>}, {transform_indices = @transform_4, window_bounds = array<i64: 1, 8, 1>}]} {
    %cst = arith.constant 0.000000e+00 : f32
    %0 = vector.broadcast %cst : f32 to vector<18x18x4xf32>
    %c0 = arith.constant 0 : index
    %c0_0 = arith.constant 0 : index
    %c0_1 = arith.constant 0 : index
    %1 = vector.load %arg6[%c0, %c0_0, %c0_1] : memref<18x18x4xf32, #tpu.memory_space<vmem>>, vector<18x18x4xf32>
    tpu.vector_store %arg6[%c0, %c0_0, %c0_1], %0 {strides = array<i32>} : memref<18x18x4xf32, #tpu.memory_space<vmem>>, vector<18x18x4xf32>,
    %c0_2 = arith.constant 0 : index
    %c0_3 = arith.constant 0 : index
    %c0_4 = arith.constant 0 : index
    %c0_5 = arith.constant 0 : index
    %2 = vector.load %arg1[%c0_2, %c0_3, %c0_4, %c0_5] : memref<1x16x16x4xf32, #tpu.memory_space<vmem>>, vector<1x16x16x4xf32>
    %3 = vector.shape_cast %2 : vector<1x16x16x4xf32> to vector<16x16x4xf32>
    %c1 = arith.constant 1 : index
    %c1_6 = arith.constant 1 : index
    %c0_7 = arith.constant 0 : index
    %4 = vector.load %arg6[%c1, %c1_6, %c0_7] : memref<18x18x4xf32, #tpu.memory_space<vmem>>, vector<16x16x4xf32>
    tpu.vector_store %arg6[%c1, %c1_6, %c0_7], %3 {strides = array<i32>} : memref<18x18x4xf32, #tpu.memory_space<vmem>>, vector<16x16x4xf32>,
    %c0_8 = arith.constant 0 : index
    %c0_9 = arith.constant 0 : index
    %c0_10 = arith.constant 0 : index
    %5 = vector.load %arg6[%c0_8, %c0_9, %c0_10] : memref<18x18x4xf32, #tpu.memory_space<vmem>>, vector<16x16x4xf32>
    %6 = vector.shape_cast %5 : vector<16x16x4xf32> to vector<256x4xf32>
    %c0_11 = arith.constant 0 : index
    %c1_12 = arith.constant 1 : index
    %c0_13 = arith.constant 0 : index
    %7 = vector.load %arg6[%c0_11, %c1_12, %c0_13] : memref<18x18x4xf32, #tpu.memory_space<vmem>>, vector<16x16x4xf32>
    %8 = vector.shape_cast %7 : vector<16x16x4xf32> to vector<256x4xf32>
    %c0_14 = arith.constant 0 : index
    %c2 = arith.constant 2 : index
    %c0_15 = arith.constant 0 : index
    %9 = vector.load %arg6[%c0_14, %c2, %c0_15] : memref<18x18x4xf32, #tpu.memory_space<vmem>>, vector<16x16x4xf32>
    %10 = vector.shape_cast %9 : vector<16x16x4xf32> to vector<256x4xf32>
    %c1_16 = arith.constant 1 : index
    %c0_17 = arith.constant 0 : index
    %c0_18 = arith.constant 0 : index
    %11 = vector.load %arg6[%c1_16, %c0_17, %c0_18] : memref<18x18x4xf32, #tpu.memory_space<vmem>>, vector<16x16x4xf32>
    %12 = vector.shape_cast %11 : vector<16x16x4xf32> to vector<256x4xf32>
    %c1_19 = arith.constant 1 : index
    %c1_20 = arith.constant 1 : index
    %c0_21 = arith.constant 0 : index
    %13 = vector.load %arg6[%c1_19, %c1_20, %c0_21] : memref<18x18x4xf32, #tpu.memory_space<vmem>>, vector<16x16x4xf32>
    %14 = vector.shape_cast %13 : vector<16x16x4xf32> to vector<256x4xf32>
    %c1_22 = arith.constant 1 : index
    %c2_23 = arith.constant 2 : index
    %c0_24 = arith.constant 0 : index
    %15 = vector.load %arg6[%c1_22, %c2_23, %c0_24] : memref<18x18x4xf32, #tpu.memory_space<vmem>>, vector<16x16x4xf32>
    %16 = vector.shape_cast %15 : vector<16x16x4xf32> to vector<256x4xf32>
    %c2_25 = arith.constant 2 : index
    %c0_26 = arith.constant 0 : index
    %c0_27 = arith.constant 0 : index
    %17 = vector.load %arg6[%c2_25, %c0_26, %c0_27] : memref<18x18x4xf32, #tpu.memory_space<vmem>>, vector<16x16x4xf32>
    %18 = vector.shape_cast %17 : vector<16x16x4xf32> to vector<256x4xf32>
    %c2_28 = arith.constant 2 : index
    %c1_29 = arith.constant 1 : index
    %c0_30 = arith.constant 0 : index
    %19 = vector.load %arg6[%c2_28, %c1_29, %c0_30] : memref<18x18x4xf32, #tpu.memory_space<vmem>>, vector<16x16x4xf32>
    %20 = vector.shape_cast %19 : vector<16x16x4xf32> to vector<256x4xf32>
    %c2_31 = arith.constant 2 : index
    %c2_32 = arith.constant 2 : index
    %c0_33 = arith.constant 0 : index
    %21 = vector.load %arg6[%c2_31, %c2_32, %c0_33] : memref<18x18x4xf32, #tpu.memory_space<vmem>>, vector<16x16x4xf32>
    %22 = vector.shape_cast %21 : vector<16x16x4xf32> to vector<256x4xf32>
    %23 = tpu.concatenate %6, %8, %10, %12, %14, %16, %18, %20, %22 in 1 : vector<256x4xf32>, vector<256x4xf32>, vector<256x4xf32>, vector<256x4xf32>, vector<256x4xf32>, vector<256x4xf32>, vector<256x4xf32>, vector<256x4xf32>, vector<256x4xf32> -> vector<256x36xf32>
    %c0_34 = arith.constant 0 : index
    %c0_35 = arith.constant 0 : index
    %24 = vector.load %arg2[%c0_34, %c0_35] : memref<8x36xf32, #tpu.memory_space<vmem>>, vector<8x36xf32>
    %cst_36 = arith.constant dense<0.000000e+00> : vector<8x256xf32>
    %25 = tpu.matmul %24, %23, %cst_36 {dimension_numbers = #tpu.dot_dimension_numbers<[1], [1], [0], [0], [0, 0, 1, 0], [], []>} : vector<8x36xf32>, vector<256x36xf32>, vector<8x256xf32> -> vector<8x256xf32>
    %c0_37 = arith.constant 0 : index
    %c0_38 = arith.constant 0 : index
    %c0_39 = arith.constant 0 : index
    %26 = vector.load %arg3[%c0_37, %c0_38, %c0_39] : memref<1x8x256xf32, #tpu.memory_space<vmem>>, vector<1x8x256xf32>
    %27 = vector.shape_cast %26 : vector<1x8x256xf32> to vector<8x256xf32>
    %28 = vector.shape_cast %25 : vector<8x256xf32> to vector<1x8x256xf32>
    tpu.vector_store %arg3[%c0_37, %c0_38, %c0_39], %28 {strides = array<i32>} : memref<1x8x256xf32, #tpu.memory_space<vmem>>, vector<1x8x256xf32>,
    %cst_40 = arith.constant dense<0.000000e+00> : vector<8xf32>
    %29 = vector.multi_reduction <add>, %25, %cst_40 [1] : vector<8x256xf32> to vector<8xf32>
    %30 = vector.shape_cast %29 : vector<8xf32> to vector<8x1xf32>
    %c0_41 = arith.constant 0 : index
    %c0_42 = arith.constant 0 : index
    %c0_43 = arith.constant 0 : index
    %31 = vector.load %arg4[%c0_41, %c0_42, %c0_43] : memref<1x8x1xf32, #tpu.memory_space<vmem>>, vector<1x8x1xf32>
    %32 = vector.shape_cast %31 : vector<1x8x1xf32> to vector<8x1xf32>
    %33 = vector.shape_cast %30 : vector<8x1xf32> to vector<1x8x1xf32>
    tpu.vector_store %arg4[%c0_41, %c0_42, %c0_43], %33 {strides = array<i32>} : memref<1x8x1xf32, #tpu.memory_space<vmem>>, vector<1x8x1xf32>,
    %34 = arith.mulf %25, %25 : vector<8x256xf32>
    %cst_44 = arith.constant dense<0.000000e+00> : vector<8xf32>
    %35 = vector.multi_reduction <add>, %34, %cst_44 [1] : vector<8x256xf32> to vector<8xf32>
    %36 = vector.shape_cast %35 : vector<8xf32> to vector<8x1xf32>
    %c0_45 = arith.constant 0 : index
    %c0_46 = arith.constant 0 : index
    %c0_47 = arith.constant 0 : index
    %37 = vector.load %arg5[%c0_45, %c0_46, %c0_47] : memref<1x8x1xf32, #tpu.memory_space<vmem>>, vector<1x8x1xf32>
    %38 = vector.shape_cast %37 : vector<1x8x1xf32> to vector<8x1xf32>
    %39 = vector.shape_cast %36 : vector<8x1xf32> to vector<1x8x1xf32>
    tpu.vector_store %arg5[%c0_45, %c0_46, %c0_47], %39 {strides = array<i32>} : memref<1x8x1xf32, #tpu.memory_space<vmem>>, vector<1x8x1xf32>,
    return
  }
  func.func @transform_0(%arg0: i32) -> (i32, i32, i32, i32) {
    %c0_i32 = arith.constant 0 : i32
    %c0_i32_0 = arith.constant 0 : i32
    %c0_i32_1 = arith.constant 0 : i32
    %c0_i32_2 = arith.constant 0 : i32
    return %arg0, %c0_i32, %c0_i32_0, %c0_i32_1 : i32, i32, i32, i32
  }
  func.func @transform_1(%arg0: i32) -> (i32, i32) {
    %c0_i32 = arith.constant 0 : i32
    %c0_i32_0 = arith.constant 0 : i32
    %c0_i32_1 = arith.constant 0 : i32
    return %c0_i32, %c0_i32_0 : i32, i32
  }
  func.func @transform_2(%arg0: i32) -> (i32, i32, i32) {
    %c0_i32 = arith.constant 0 : i32
    %c0_i32_0 = arith.constant 0 : i32
    %c0_i32_1 = arith.constant 0 : i32
    return %arg0, %c0_i32, %c0_i32_0 : i32, i32, i32
  }
  func.func @transform_3(%arg0: i32) -> (i32, i32, i32) {
    %c0_i32 = arith.constant 0 : i32
    %c0_i32_0 = arith.constant 0 : i32
    %c0_i32_1 = arith.constant 0 : i32
    return %arg0, %c0_i32, %c0_i32_0 : i32, i32, i32
  }
  func.func @transform_4(%arg0: i32) -> (i32, i32, i32) {
    %c0_i32 = arith.constant 0 : i32
    %c0_i32_0 = arith.constant 0 : i32
    %c0_i32_1 = arith.constant 0 : i32
    return %arg0, %c0_i32, %c0_i32_0 : i32, i32, i32
  }
}

</mosaic_0001>

<bundles_post_ra>
// kernel: tpu_custom_call.1
= control target key start
LH: loop header
LB: loop body
LE: loop exit
PB: predicated region body
PF: predicated region fallthrough
CT: control target
= control target key end

     0   :  { %10 = vsyncpa [#allocation4], 0  ;;  %s4156_s0 = inlined_call_operand.vmem [shape: f32[2,16,16,4], index: 0, kind: input, shape index: {}]   ;;  %s4157_s1 = inlined_call_operand.vmem [shape: f32[8,36], index: 1, kind: input, shape index: {}]   ;;  %s4158_s2 = inlined_call_operand.hbm [shape: f32[2,8,256], index: 2, kind: output, shape index: {0}]   ;;  %s4159_s3 = inlined_call_operand.vmem [shape: f32[2,8,1], index: 3, kind: output, shape index: {1}]   ;;  %s4160_s4 = inlined_call_operand.vmem [shape: f32[2,8,1], index: 4, kind: output, shape index: {2}]  }
   0x1   :  { %12 = vsyncpa [#allocation4 + $0x1], 0  ;;  %s2407_s15 = smov 0   ;;  %s2409_s16 = smov 0  }
   0x2   :  { %s2411_s17 = smov 0   ;;  %s2413_s18 = smov 0  }
   0x3 LB: > { %s2428_s19 = sadd.s32 4294967295, %s2371_s18   ;;  %s2206_s20 = sadd.s32 4294967294, %s2371_s18   ;;  %s2371_s18 = sphi %s2413_s18, %s4431_s18   ;;  %s2367_s17 = sphi %s2411_s17, %s4430_s17   ;;  %s2363_s16 = sphi %s2409_s16, %s4429_s16   ;;  %s2359_s15 = sphi %s2407_s15, %s4428_s15  }
   0x4   : > { %s2432_s21 = sadd.s32 1, %s2371_s18   ;;  %s72_s22 = sadd.s32 1, %s2367_s17 }
   0x5   : > { %s69_s23 = ssub.s32 %s2371_s18, %s2432_s21  ;;  %p82_p0 = scmp.ne.s32.totalorder %s2367_s17, %s2363_s16 }
   0x6   : > { %p70_p1 = scmp.eq.s32.totalorder %s69_s23, 0  ;;  %p83_p2 = scmp.eq.s32.totalorder %s2428_s19, 1 }
   0x7   : > { %p88_p3 = scmp.ne.s32.totalorder %s2363_s16, %s2359_s15  ;;  %p89_p4 = scmp.eq.s32.totalorder %s2206_s20, 1 }
   0x8   : > { %s2443_s24 = scalar_select %p70_p1, %s2367_s17, %s72_s22  }
   0x9   : > { %p2445_p5 = por %p83_p2, %p82_p0  ;;  %p2449_p6 = por %p89_p4, %p88_p3 }
   0xa   : > { %p2209_p7 = scmp.ge.s32.totalorder %s2371_s18, 1  ;;  %p170_p8 = scmp.lt.s32.totalorder %s2371_s18, 3 }
   0xc   : > { %p171_p9 = pnand %p2209_p7, %p170_p8 }
   0xe   : > { %174 = sbr.rel (%p171_p9) target bundleno = 1116 (0x45c), region = 28 }
  0x13   : > { %vm217_vm0 = vcmask 31744   ;;  %v2373_v0 = vmov 0.0   ;;  %s2374_s27 = smov 4   ;;  %p204_p10 = scmp.lt.s32.totalorder %s2428_s19, 1  ;;  %vm220_vm1 = vcmask 25600   ;;  %vm1683_vm2 = vcmask 64512  }
  0x14   : > { %218 = vst.msk [vmem:[#allocation2] sm:$0xff] %vm217_vm0, %v2373_v0  ;;  %s2375_s7 = smov 8   ;;  %s2376_s8 = smov 12   ;;  %vm1716_vm3 = vcmask 97280   ;;  %vm1749_vm4 = vcmask 130048   ;;  %vm1782_vm5 = vcmask 162816  }
  0x15   : > { %219 = vst.msk [vmem:[#allocation2 + $0x8] sm:$0xff] %vm217_vm0, %v2373_v0  ;;  %s2506_s28 = scalar_select %p204_p10, %s2428_s19, 1  ;;  %vm1815_vm6 = vcmask 195584   ;;  %vm1881_vm7 = vcmask 261120   ;;  %vm1848_vm8 = vcmask 228352   ;;  %vm1915_vm9 = vcmask 293888  }
  0x16   : > { %222 = vst.msk [vmem:[#allocation2 + $0x18] sm:$0xff] %vm217_vm0, %v2373_v0  ;;  %s2377_s9 = smov 16   ;;  %s2378_s10 = smov 20  }
  0x17   : > { %223 = vst.msk [vmem:[#allocation2 + $0x20] sm:$0xff] %vm217_vm0, %v2373_v0  ;;  %s2254_s29 = sshll.u32 %s2506_s28, 8  ;;  %s2379_s11 = smov 24  }
  0x18   : > { %225 = vst.msk [vmem:[#allocation2 + $0x30] sm:$0xff] %vm217_vm0, %v2373_v0  ;;  %s2526_s6 = scalar_lea.vmem %s4156_s0, %s2254_s29  ;;  %s2380_s12 = smov 28  }
  0x19   : > { %226 = vst.msk [vmem:[#allocation2 + $0x38] sm:$0xff] %vm217_vm0, %v2373_v0  ;;  %v275_v2 = vld [vmem:[%s2526_s6 + $0x10] sm:$0xff]  ;;  %v273_v3 = vld [vmem:[%s2526_s6] sm:$0xff]  ;;  %v276_v7 = vld [vmem:[%s2526_s6 + $0x18] sm:$0xff]  ;;  %s2381_s13 = smov 32   ;;  %s189_s22 = sand.u32 1, %s2363_s16  }
  0x1a   : > { %228 = vst.msk [vmem:[#allocation2 + $0x48] sm:$0xff] %vm217_vm0, %v2373_v0  ;;  %v274_v8 = vld [vmem:[%s2526_s6 + $0x8] sm:$0xff]  ;;  %v277_v9 = vld [vmem:[%s2526_s6 + $0x20] sm:$0xff]  ;;  %v279_v10 = vld [vmem:[%s2526_s6 + $0x30] sm:$0xff]  ;;  %s2210_s23 = sshll.u32 %s189_s22, 4 }
  0x1b   : > { %229 = vst.msk [vmem:[#allocation2 + $0x50] sm:$0xff] %vm217_vm0, %v2373_v0  ;;  %v278_v11 = vld [vmem:[%s2526_s6 + $0x28] sm:$0xff]  ;;  %v280_v12 = vld [vmem:[%s2526_s6 + $0x38] sm:$0xff]  ;;  %v281_v14 = vld [vmem:[%s2526_s6 + $0x40] sm:$0xff] }
  0x1c   : > { %v370_v1 = vld [vmem:[#allocation2 + $0x1] sm:$0xff]  ;;  %231 = vst.msk [vmem:[#allocation2 + $0x60] sm:$0xff] %vm217_vm0, %v2373_v0  ;;  %v283_v15 = vld [vmem:[%s2526_s6 + $0x50] sm:$0xff]  ;;  %v284_v18 = vld [vmem:[%s2526_s6 + $0x58] sm:$0xff] }
  0x1d   : > { %659 = vrot.lane.b32.xlu0 %v370_v1, %s2374_s27  ;;  %232 = vst.msk [vmem:[#allocation2 + $0x68] sm:$0xff] %vm217_vm0, %v2373_v0  ;;  %v282_v13 = vld [vmem:[%s2526_s6 + $0x48] sm:$0xff]  ;;  %v285_v16 = vld [vmem:[%s2526_s6 + $0x60] sm:$0xff]  ;;  %v288_v22 = vld [vmem:[%s2526_s6 + $0x78] sm:$0xff] }
  0x1e   : > { %234 = vst.msk [vmem:[#allocation2 + $0x78] sm:$0xff] %vm217_vm0, %v2373_v0  ;;  %v286_v20 = vld [vmem:[%s2526_s6 + $0x68] sm:$0xff]  ;;  %v287_v23 = vld [vmem:[%s2526_s6 + $0x70] sm:$0xff]  ;;  %v289_v24 = vld [vmem:[%s2526_s6 + $0x80] sm:$0xff] }
  0x1f   : > { %235 = vst.msk [vmem:[#allocation2 + $0x80] sm:$0xff] %vm217_vm0, %v2373_v0  ;;  %v291_v25 = vld [vmem:[%s2526_s6 + $0x90] sm:$0xff]  ;;  %v290_v27 = vld [vmem:[%s2526_s6 + $0x88] sm:$0xff]  ;;  %v292_v29 = vld [vmem:[%s2526_s6 + $0x98] sm:$0xff] }
  0x20   : > { %237 = vst.msk [vmem:[#allocation2 + $0x90] sm:$0xff] %vm217_vm0, %v2373_v0  ;;  %v294_v31 = vld [vmem:[%s2526_s6 + $0xa8] sm:$0xff]  ;;  %v293_v32 = vld [vmem:[%s2526_s6 + $0xa0] sm:$0xff]  ;;  %v295_v33 = vld [vmem:[%s2526_s6 + $0xb0] sm:$0xff] }
  0x21   : > { %238 = vst.msk [vmem:[#allocation2 + $0x98] sm:$0xff] %vm217_vm0, %v2373_v0  ;;  %v297_v37 = vld [vmem:[%s2526_s6 + $0xc0] sm:$0xff]  ;;  %v296_v38 = vld [vmem:[%s2526_s6 + $0xb8] sm:$0xff]  ;;  %v298_v39 = vld [vmem:[%s2526_s6 + $0xc8] sm:$0xff] }
  0x22   : > { %240 = vst.msk [vmem:[#allocation2 + $0xa8] sm:$0xff] %vm217_vm0, %v2373_v0  ;;  %v300_v43 = vld [vmem:[%s2526_s6 + $0xd8] sm:$0xff]  ;;  %v299_v44 = vld [vmem:[%s2526_s6 + $0xd0] sm:$0xff]  ;;  %v301_v45 = vld [vmem:[%s2526_s6 + $0xe0] sm:$0xff] }
  0x23   : > { %241 = vst.msk [vmem:[#allocation2 + $0xb0] sm:$0xff] %vm217_vm0, %v2373_v0  ;;  %v302_v49 = vld [vmem:[%s2526_s6 + $0xe8] sm:$0xff] }
  0x24   : > { %243 = vst.msk [vmem:[#allocation2 + $0xc0] sm:$0xff] %vm217_vm0, %v2373_v0  ;;  %v402_v62 = vld [vmem:[#allocation2 + $0x2] sm:$0xff] }
  0x25   : > { %244 = vst.msk [vmem:[#allocation2 + $0xc8] sm:$0xff] %vm217_vm0, %v2373_v0 }
  0x26   : > { %246 = vst.msk [vmem:[#allocation2 + $0xd8] sm:$0xff] %vm217_vm0, %v2373_v0 }
  0x27   : > { %247 = vst.msk [vmem:[#allocation2 + $0xe0] sm:$0xff] %vm217_vm0, %v2373_v0 }
  0x28   : > { %249 = vst.msk [vmem:[#allocation2 + $0xf0] sm:$0xff] %vm217_vm0, %v2373_v0 }
  0x29   : > { %250 = vst.msk [vmem:[#allocation2 + $0xf8] sm:$0xff] %vm217_vm0, %v2373_v0 }
  0x2a   : > { %252 = vst.msk [vmem:[#allocation2 + $0x108] sm:$0xff] %vm217_vm0, %v2373_v0 }
  0x2b   : > { %253 = vst.msk [vmem:[#allocation2 + $0x110] sm:$0xff] %vm217_vm0, %v2373_v0 }
  0x2c   : > { %255 = vst.msk [vmem:[#allocation2 + $0x120] sm:$0xff] %vm217_vm0, %v2373_v0 }
  0x2d   : > { %256 = vst.msk [vmem:[#allocation2 + $0x128] sm:$0xff] %vm217_vm0, %v2373_v0 }
  0x2e   : > { %258 = vst.msk [vmem:[#allocation2 + $0x138] sm:$0xff] %vm217_vm0, %v2373_v0 }
  0x2f   : > { %259 = vst.msk [vmem:[#allocation2 + $0x140] sm:$0xff] %vm217_vm0, %v2373_v0 }
  0x30   : > { %261 = vst.msk [vmem:[#allocation2 + $0x150] sm:$0xff] %vm217_vm0, %v2373_v0 }
  0x31   : > { %262 = vst.msk [vmem:[#allocation2 + $0x158] sm:$0xff] %vm217_vm0, %v2373_v0 }
  0x32   : > { %264 = vst.msk [vmem:[#allocation2 + $0x168] sm:$0xff] %vm217_vm0, %v2373_v0 }
  0x33   : > { %265 = vst.msk [vmem:[#allocation2 + $0x170] sm:$0xff] %vm217_vm0, %v2373_v0 }
  0x34   : > { %267 = vst.msk [vmem:[#allocation2 + $0x180] sm:$0xff] %vm217_vm0, %v2373_v0 }
  0x35   : > { %268 = vst.msk [vmem:[#allocation2 + $0x188] sm:$0xff] %vm217_vm0, %v2373_v0 }
  0x36   : > { %270 = vst.msk [vmem:[#allocation2 + $0x198] sm:$0xff] %vm217_vm0, %v2373_v0 }
  0x37   : > { %271 = vst.msk [vmem:[#allocation2 + $0x1a0] sm:$0xff] %vm217_vm0, %v2373_v0 }
  0x38   : > { %308 = vst.msk [vmem:[#allocation2 + $0x31] sm:$0xff] %vm217_vm0, %v275_v2 }
  0x39   : > { %306 = vst.msk [vmem:[#allocation2 + $0x19] sm:$0xff] %vm217_vm0, %v273_v3 }
  0x3a   : > { %221 = vst.msk [vmem:[#allocation2 + $0x10] sm:$0x3] %vm220_vm1, %v2373_v0 }
  0x3b   : > { %224 = vst.msk [vmem:[#allocation2 + $0x28] sm:$0x3] %vm220_vm1, %v2373_v0 }
  0x3c   : > { %227 = vst.msk [vmem:[#allocation2 + $0x40] sm:$0x3] %vm220_vm1, %v2373_v0 }
  0x3d   : > { %230 = vst.msk [vmem:[#allocation2 + $0x58] sm:$0x3] %vm220_vm1, %v2373_v0 }
  0x3e   : > { %233 = vst.msk [vmem:[#allocation2 + $0x70] sm:$0x3] %vm220_vm1, %v2373_v0 }
  0x3f   : > { %v2552_v4 = vld [vmem:[#allocation2 + $0x31] sm:$0xff]  ;;  %236 = vst.msk [vmem:[#allocation2 + $0x88] sm:$0x3] %vm220_vm1, %v2373_v0 }
  0x40   : > { %667 = vrot.lane.b32.xlu2 %v2552_v4, %s2374_s27  ;;  %v2558_v5 = vld [vmem:[#allocation2 + $0x19] sm:$0xff]  ;;  %239 = vst.msk [vmem:[#allocation2 + $0xa0] sm:$0x3] %vm220_vm1, %v2373_v0 }
  0x41   : > { %663 = vrot.lane.b32.xlu1 %v2558_v5, %s2374_s27  ;;  %v371_v6 = vld [vmem:[#allocation2 + $0x9] sm:$0xff]  ;;  %242 = vst.msk [vmem:[#allocation2 + $0xb8] sm:$0x3] %vm220_vm1, %v2373_v0 }
  0x42   : > { %661 = vrot.lane.b32.xlu0 %v371_v6, %s2374_s27  ;;  %245 = vst.msk [vmem:[#allocation2 + $0xd0] sm:$0x3] %vm220_vm1, %v2373_v0 }
  0x43   : > { %248 = vst.msk [vmem:[#allocation2 + $0xe8] sm:$0x3] %vm220_vm1, %v2373_v0 }
  0x44   : > { %251 = vst.msk [vmem:[#allocation2 + $0x100] sm:$0x3] %vm220_vm1, %v2373_v0 }
  0x45   : > { %254 = vst.msk [vmem:[#allocation2 + $0x118] sm:$0x3] %vm220_vm1, %v2373_v0 }
  0x46   : > { %257 = vst.msk [vmem:[#allocation2 + $0x130] sm:$0x3] %vm220_vm1, %v2373_v0 }
  0x47   : > { %260 = vst.msk [vmem:[#allocation2 + $0x148] sm:$0x3] %vm220_vm1, %v2373_v0 }
  0x48   : > { %263 = vst.msk [vmem:[#allocation2 + $0x160] sm:$0x3] %vm220_vm1, %v2373_v0 }
  0x49   : > { %266 = vst.msk [vmem:[#allocation2 + $0x178] sm:$0x3] %vm220_vm1, %v2373_v0 }
  0x4a   : > { %269 = vst.msk [vmem:[#allocation2 + $0x190] sm:$0x3] %vm220_vm1, %v2373_v0 }
  0x4b   : > { %272 = vst.msk [vmem:[#allocation2 + $0x1a8] sm:$0x3] %vm220_vm1, %v2373_v0  ;;  %v403_v0 = vld [vmem:[#allocation2 + $0xa] sm:$0xff] }
  0x4c   : > { %309 = vst.msk [vmem:[#allocation2 + $0x39] sm:$0xff] %vm217_vm0, %v276_v7 }
  0x4d   : > { %307 = vst.msk [vmem:[#allocation2 + $0x21] sm:$0xff] %vm217_vm0, %v274_v8 }
  0x4e   : > { %310 = vst.msk [vmem:[#allocation2 + $0x49] sm:$0xff] %vm217_vm0, %v277_v9 }
  0x4f   : > { %312 = vst.msk [vmem:[#allocation2 + $0x61] sm:$0xff] %vm217_vm0, %v279_v10 }
  0x50   : > { %311 = vst.msk [vmem:[#allocation2 + $0x51] sm:$0xff] %vm217_vm0, %v278_v11 }
  0x51   : > { %313 = vst.msk [vmem:[#allocation2 + $0x69] sm:$0xff] %vm217_vm0, %v280_v12 }
  0x52   : > { %315 = vst.msk [vmem:[#allocation2 + $0x81] sm:$0xff] %vm217_vm0, %v282_v13 }
  0x53   : > { %v2604_v17 = vld [vmem:[#allocation2 + $0x39] sm:$0xff]  ;;  %314 = vst.msk [vmem:[#allocation2 + $0x79] sm:$0xff] %vm217_vm0, %v281_v14 }
  0x54   : > { %669 = vrot.lane.b32.xlu2 %v2604_v17, %s2374_s27  ;;  %v2610_v19 = vld [vmem:[#allocation2 + $0x21] sm:$0xff]  ;;  %316 = vst.msk [vmem:[#allocation2 + $0x91] sm:$0xff] %vm217_vm0, %v283_v15  ;;  %v2761_v3 = vld [vmem:[#allocation2 + $0x32] sm:$0xff] }
  0x55   : > { %665 = vrot.lane.b32.xlu1 %v2610_v19, %s2374_s27  ;;  %v2616_v21 = vld [vmem:[#allocation2 + $0x49] sm:$0xff]  ;;  %318 = vst.msk [vmem:[#allocation2 + $0xa9] sm:$0xff] %vm217_vm0, %v285_v16  ;;  %v2759_v2 = vld [vmem:[#allocation2 + $0x1a] sm:$0xff] }
  0x56   : > { %671 = vrot.lane.b32.xlu0 %v2616_v21, %s2374_s27  ;;  %317 = vst.msk [vmem:[#allocation2 + $0x99] sm:$0xff] %vm217_vm0, %v284_v18  ;;  %v2628_v26 = vld [vmem:[#allocation2 + $0x61] sm:$0xff] }
  0x57   : > { %319 = vst.msk [vmem:[#allocation2 + $0xb1] sm:$0xff] %vm217_vm0, %v286_v20  ;;  %v2632_v28 = vld [vmem:[#allocation2 + $0x51] sm:$0xff]  ;;  %v2757_v1 = vld [vmem:[#allocation2 + $0x22] sm:$0xff]  ;;  %v2773_v8 = vld [vmem:[#allocation2 + $0x3a] sm:$0xff] }
  0x58   : > { %321 = vst.msk [vmem:[#allocation2 + $0xc9] sm:$0xff] %vm217_vm0, %v288_v22  ;;  %v2636_v30 = vld [vmem:[#allocation2 + $0x69] sm:$0xff]  ;;  %v2775_v9 = vld [vmem:[#allocation2 + $0x52] sm:$0xff] }
  0x59   : > { %320 = vst.msk [vmem:[#allocation2 + $0xc1] sm:$0xff] %vm217_vm0, %v287_v23  ;;  %v2653_v34 = vld [vmem:[#allocation2 + $0x81] sm:$0xff]  ;;  %v2771_v7 = vld [vmem:[#allocation2 + $0x4a] sm:$0xff] }
  0x5a   : > { %322 = vst.msk [vmem:[#allocation2 + $0xd9] sm:$0xff] %vm217_vm0, %v289_v24  ;;  %v2655_v35 = vld [vmem:[#allocation2 + $0x79] sm:$0xff]  ;;  %v2785_v11 = vld [vmem:[#allocation2 + $0x6a] sm:$0xff]  ;;  %v2787_v12 = vld [vmem:[#allocation2 + $0x62] sm:$0xff] }
  0x5b   : > { %324 = vst.msk [vmem:[#allocation2 + $0xf1] sm:$0xff] %vm217_vm0, %v291_v25  ;;  %v2657_v36 = vld [vmem:[#allocation2 + $0x91] sm:$0xff]  ;;  %v2789_v13 = vld [vmem:[#allocation2 + $0x7a] sm:$0xff]  ;;  %v2803_v18 = vld [vmem:[#allocation2 + $0x82] sm:$0xff] }
  0x5c   : > { %675 = vrot.lane.b32.xlu2 %v2628_v26, %s2374_s27  ;;  %323 = vst.msk [vmem:[#allocation2 + $0xe1] sm:$0xff] %vm217_vm0, %v290_v27  ;;  %v2671_v40 = vld [vmem:[#allocation2 + $0xa9] sm:$0xff] }
  0x5d   : > { %673 = vrot.lane.b32.xlu1 %v2632_v28, %s2374_s27  ;;  %325 = vst.msk [vmem:[#allocation2 + $0xf9] sm:$0xff] %vm217_vm0, %v292_v29  ;;  %v2673_v41 = vld [vmem:[#allocation2 + $0x99] sm:$0xff] }
  0x5e   : > { %677 = vrot.lane.b32.xlu0 %v2636_v30, %s2374_s27  ;;  %327 = vst.msk [vmem:[#allocation2 + $0x111] sm:$0xff] %vm217_vm0, %v294_v31  ;;  %v2675_v42 = vld [vmem:[#allocation2 + $0xb1] sm:$0xff]  ;;  %v2805_v20 = vld [vmem:[#allocation2 + $0x9a] sm:$0xff] }
  0x5f   : > { %326 = vst.msk [vmem:[#allocation2 + $0x109] sm:$0xff] %vm217_vm0, %v293_v32  ;;  %v2689_v46 = vld [vmem:[#allocation2 + $0xc9] sm:$0xff]  ;;  %v2801_v16 = vld [vmem:[#allocation2 + $0x92] sm:$0xff] }
  0x60   : > { %328 = vst.msk [vmem:[#allocation2 + $0x121] sm:$0xff] %vm217_vm0, %v295_v33  ;;  %v2691_v47 = vld [vmem:[#allocation2 + $0xc1] sm:$0xff]  ;;  %v2819_v25 = vld [vmem:[#allocation2 + $0xb2] sm:$0xff]  ;;  %v2821_v27 = vld [vmem:[#allocation2 + $0xaa] sm:$0xff] }
  0x61   : > { %330 = vst.msk [vmem:[#allocation2 + $0x139] sm:$0xff] %vm217_vm0, %v297_v37  ;;  %v2693_v48 = vld [vmem:[#allocation2 + $0xd9] sm:$0xff]  ;;  %v2823_v29 = vld [vmem:[#allocation2 + $0xc2] sm:$0xff] }
  0x62   : > { %329 = vst.msk [vmem:[#allocation2 + $0x129] sm:$0xff] %vm217_vm0, %v296_v38  ;;  %v2703_v50 = vld [vmem:[#allocation2 + $0xf1] sm:$0xff] }
  0x63   : > { %331 = vst.msk [vmem:[#allocation2 + $0x141] sm:$0xff] %vm217_vm0, %v298_v39  ;;  %v2705_v51 = vld [vmem:[#allocation2 + $0xe1] sm:$0xff]  ;;  %v2839_v38 = vld [vmem:[#allocation2 + $0xca] sm:$0xff] }
  0x64   : > { %681 = vrot.lane.b32.xlu2 %v2653_v34, %s2374_s27  ;;  %333 = vst.msk [vmem:[#allocation2 + $0x159] sm:$0xff] %vm217_vm0, %v300_v43  ;;  %v2707_v52 = vld [vmem:[#allocation2 + $0xf9] sm:$0xff]  ;;  %v2841_v39 = vld [vmem:[#allocation2 + $0xe2] sm:$0xff] }
  0x65   : > { %679 = vrot.lane.b32.xlu1 %v2655_v35, %s2374_s27  ;;  %332 = vst.msk [vmem:[#allocation2 + $0x151] sm:$0xff] %vm217_vm0, %v299_v44  ;;  %v2715_v53 = vld [vmem:[#allocation2 + $0x111] sm:$0xff]  ;;  %v2837_v37 = vld [vmem:[#allocation2 + $0xda] sm:$0xff] }
  0x66   : > { %683 = vrot.lane.b32.xlu0 %v2657_v36, %s2374_s27  ;;  %334 = vst.msk [vmem:[#allocation2 + $0x169] sm:$0xff] %vm217_vm0, %v301_v45  ;;  %v2717_v54 = vld [vmem:[#allocation2 + $0x109] sm:$0xff] }
  0x67   : > { %335 = vst.msk [vmem:[#allocation2 + $0x171] sm:$0xff] %vm217_vm0, %v302_v49  ;;  %v2719_v55 = vld [vmem:[#allocation2 + $0x121] sm:$0xff] }
  0x68   : > { %v2727_v56 = vld [vmem:[#allocation2 + $0x139] sm:$0xff] }
  0x69   : > { %v2729_v57 = vld [vmem:[#allocation2 + $0x129] sm:$0xff]  ;;  %v2855_v49 = vld [vmem:[#allocation2 + $0xfa] sm:$0xff] }
  0x6a   : > { %v2731_v58 = vld [vmem:[#allocation2 + $0x141] sm:$0xff] }
  0x6b   : > { %v2739_v59 = vld [vmem:[#allocation2 + $0x159] sm:$0xff] }
  0x6c   : > { %687 = vrot.lane.b32.xlu2 %v2671_v40, %s2374_s27  ;;  %v2741_v60 = vld [vmem:[#allocation2 + $0x151] sm:$0xff] }
  0x6d   : > { %685 = vrot.lane.b32.xlu1 %v2673_v41, %s2374_s27  ;;  %v2743_v61 = vld [vmem:[#allocation2 + $0x169] sm:$0xff] }
  0x6e   : > { %689 = vrot.lane.b32.xlu0 %v2675_v42, %s2374_s27  ;;  %v2751_v63 = vld [vmem:[#allocation2 + $0x171] sm:$0xff] }
  0x74   : > { %693 = vrot.lane.b32.xlu2 %v2689_v46, %s2374_s27 }
  0x75   : > { %691 = vrot.lane.b32.xlu1 %v2691_v47, %s2374_s27 }
  0x76   : > { %695 = vrot.lane.b32.xlu0 %v2693_v48, %s2374_s27 }
  0x7c   : > { %699 = vrot.lane.b32.xlu2 %v2703_v50, %s2374_s27 }
  0x7d   : > { %697 = vrot.lane.b32.xlu1 %v2705_v51, %s2374_s27 }
  0x7e   : > { %701 = vrot.lane.b32.xlu0 %v2707_v52, %s2374_s27 }
  0x84   : > { %705 = vrot.lane.b32.xlu2 %v2715_v53, %s2374_s27 }
  0x85   : > { %703 = vrot.lane.b32.xlu1 %v2717_v54, %s2374_s27 }
  0x86   : > { %707 = vrot.lane.b32.xlu0 %v2719_v55, %s2374_s27 }
  0x8c   : > { %711 = vrot.lane.b32.xlu2 %v2727_v56, %s2374_s27 }
  0x8d   : > { %709 = vrot.lane.b32.xlu1 %v2729_v57, %s2374_s27 }
  0x8e   : > { %713 = vrot.lane.b32.xlu0 %v2731_v58, %s2374_s27 }
  0x8f   : > { %v2793_v14 = vpop.permute.xlu0 %659 }
  0x90   : > { %4205 = vst [vmem:[#allocation8_spill] sm:$0xff] %v2793_v14  ;;  %v2891_v14 = vld [vmem:[#allocation2 + $0x142] sm:$0xff] }
  0x91   : > { %4223 = vst [vmem:[#allocation26_spill] sm:$0xff] %v2891_v14 }
  0x94   : > { %717 = vrot.lane.b32.xlu2 %v2739_v59, %s2374_s27 }
  0x95   : > { %715 = vrot.lane.b32.xlu1 %v2741_v60, %s2374_s27 }
  0x96   : > { %719 = vrot.lane.b32.xlu0 %v2743_v61, %s2374_s27 }
  0x9a   : > { %v2765_v6 = vpop.permute.xlu2 %667 }
  0x9b   : > { %4203 = vst [vmem:[#allocation6_spill] sm:$0xff] %v2765_v6  ;;  %v2895_v6 = vld [vmem:[#allocation2 + $0x152] sm:$0xff] }
  0x9c   : > { %787 = vrot.lane.b32.xlu2 %v402_v62, %s2375_s7  ;;  %v2857_v62 = vld [vmem:[#allocation2 + $0xf2] sm:$0xff]  ;;  %4224 = vst [vmem:[#allocation27_spill] sm:$0xff] %v2895_v6 }
  0x9d   : > { %721 = vrot.lane.b32.xlu1 %v2751_v63, %s2374_s27  ;;  %s2255_s27 = sshll.u32 %s2428_s19, 4 }
  0x9e   : > { %789 = vrot.lane.b32.xlu0 %v403_v0, %s2375_s7  ;;  %v2859_v0 = vld [vmem:[#allocation2 + $0x10a] sm:$0xff]  ;;  %s2088_s5 = scalar_lea.hbm %s4158_s2, %s2255_s27 }
  0xa4   : > { %793 = vrot.lane.b32.xlu2 %v2757_v1, %s2375_s7 }
  0xa5   : > { %791 = vrot.lane.b32.xlu1 %v2759_v2, %s2375_s7 }
  0xa6   : > { %795 = vrot.lane.b32.xlu0 %v2761_v3, %s2375_s7 }
  0xac   : > { %799 = vrot.lane.b32.xlu2 %v2771_v7, %s2375_s7 }
  0xad   : > { %797 = vrot.lane.b32.xlu1 %v2773_v8, %s2375_s7 }
  0xae   : > { %801 = vrot.lane.b32.xlu0 %v2775_v9, %s2375_s7  ;;  %v2783_v10 = vpop.permute.xlu2 %669 }
  0xaf   : > { %4204 = vst [vmem:[#allocation7_spill] sm:$0xff] %v2783_v10  ;;  %v2877_v10 = vld [vmem:[#allocation2 + $0x12a] sm:$0xff] }
  0xb0   : > { %4219 = vst [vmem:[#allocation22_spill] sm:$0xff] %v2877_v10 }
  0xb3   : > { %v2811_v22 = vpop.permute.xlu1 %663 }
  0xb4   : > { %805 = vrot.lane.b32.xlu2 %v2785_v11, %s2375_s7  ;;  %4207 = vst [vmem:[#allocation10_spill] sm:$0xff] %v2811_v22  ;;  %v2817_v24 = vpop.permute.xlu0 %661 }
  0xb5   : > { %803 = vrot.lane.b32.xlu1 %v2787_v12, %s2375_s7  ;;  %4209 = vst [vmem:[#allocation12_spill] sm:$0xff] %v2817_v24 }
  0xb6   : > { %807 = vrot.lane.b32.xlu0 %v2789_v13, %s2375_s7  ;;  %v2799_v15 = vpop.permute.xlu2 %675 }
  0xb7   : > { %4206 = vst [vmem:[#allocation9_spill] sm:$0xff] %v2799_v15  ;;  %v2873_v15 = vld [vmem:[#allocation2 + $0x122] sm:$0xff] }
  0xbc   : > { %811 = vrot.lane.b32.xlu2 %v2801_v16, %s2375_s7 }
  0xbd   : > { %809 = vrot.lane.b32.xlu1 %v2803_v18, %s2375_s7 }
  0xbe   : > { %813 = vrot.lane.b32.xlu0 %v2805_v20, %s2375_s7  ;;  %v2815_v23 = vpop.permute.xlu2 %681 }
  0xbf   : > { %4208 = vst [vmem:[#allocation11_spill] sm:$0xff] %v2815_v23 }
  0xc4   : > { %817 = vrot.lane.b32.xlu2 %v2819_v25, %s2375_s7 }
  0xc5   : > { %815 = vrot.lane.b32.xlu1 %v2821_v27, %s2375_s7 }
  0xc6   : > { %819 = vrot.lane.b32.xlu0 %v2823_v29, %s2375_s7  ;;  %v2831_v31 = vpop.permute.xlu2 %687 }
  0xc7   : > { %4210 = vst [vmem:[#allocation13_spill] sm:$0xff] %v2831_v31  ;;  %v2833_v32 = vpop.permute.xlu1 %665 }
  0xc8   : > { %4211 = vst [vmem:[#allocation14_spill] sm:$0xff] %v2833_v32  ;;  %v2835_v33 = vpop.permute.xlu0 %671  ;;  %v2913_v32 = vld [vmem:[#allocation2 + $0x172] sm:$0xff] }
  0xc9   : > { %4212 = vst [vmem:[#allocation15_spill] sm:$0xff] %v2835_v33  ;;  %v2875_v33 = vld [vmem:[#allocation2 + $0x112] sm:$0xff] }
  0xca   : > { %4230 = vst [vmem:[#allocation33_spill] sm:$0xff] %v2913_v32 }
  0xcc   : > { %823 = vrot.lane.b32.xlu2 %v2837_v37, %s2375_s7 }
  0xcd   : > { %821 = vrot.lane.b32.xlu1 %v2839_v38, %s2375_s7 }
  0xce   : > { %825 = vrot.lane.b32.xlu0 %v2841_v39, %s2375_s7  ;;  %v2849_v43 = vpop.permute.xlu2 %693 }
  0xcf   : > { %4213 = vst [vmem:[#allocation16_spill] sm:$0xff] %v2849_v43  ;;  %v2851_v44 = vpop.permute.xlu1 %673  ;;  %v2911_v43 = vld [vmem:[#allocation2 + $0x15a] sm:$0xff] }
  0xd0   : > { %4214 = vst [vmem:[#allocation17_spill] sm:$0xff] %v2851_v44  ;;  %v2853_v45 = vpop.permute.xlu0 %677  ;;  %v2893_v44 = vld [vmem:[#allocation2 + $0x13a] sm:$0xff] }
  0xd1   : > { %4215 = vst [vmem:[#allocation18_spill] sm:$0xff] %v2853_v45 }
  0xd2   : > { %4229 = vst [vmem:[#allocation32_spill] sm:$0xff] %v2911_v43 }
  0xd4   : > { %829 = vrot.lane.b32.xlu2 %v2855_v49, %s2375_s7 }
  0xd5   : > { %827 = vrot.lane.b32.xlu1 %v2857_v62, %s2375_s7 }
  0xd6   : > { %831 = vrot.lane.b32.xlu0 %v2859_v0, %s2375_s7  ;;  %v2867_v23 = vpop.permute.xlu2 %699 }
  0xd7   : > { %4216 = vst [vmem:[#allocation19_spill] sm:$0xff] %v2867_v23  ;;  %v2869_v31 = vpop.permute.xlu1 %679  ;;  %v2909_v23 = vld [vmem:[#allocation2 + $0x16a] sm:$0xff] }
  0xd8   : > { %4217 = vst [vmem:[#allocation20_spill] sm:$0xff] %v2869_v31  ;;  %v2871_v45 = vpop.permute.xlu0 %683 }
  0xd9   : > { %4218 = vst [vmem:[#allocation21_spill] sm:$0xff] %v2871_v45 }
  0xda   : > { %4228 = vst [vmem:[#allocation31_spill] sm:$0xff] %v2909_v23 }
  0xdc   : > { %835 = vrot.lane.b32.xlu2 %v2873_v15, %s2375_s7 }
  0xdd   : > { %833 = vrot.lane.b32.xlu1 %v2875_v33, %s2375_s7 }
  0xde   : > { %837 = vrot.lane.b32.xlu0 %v2877_v10, %s2375_s7  ;;  %v2885_v22 = vpop.permute.xlu2 %705  ;;  %v3019_v10 = vld [vmem:[#allocation2 + $0xe0] sm:$0xff] }
  0xdf   : > { %4220 = vst [vmem:[#allocation23_spill] sm:$0xff] %v2885_v22  ;;  %v2887_v31 = vpop.permute.xlu1 %685 }
  0xe0   : > { %4221 = vst [vmem:[#allocation24_spill] sm:$0xff] %v2887_v31  ;;  %v2889_v45 = vpop.permute.xlu0 %689 }
  0xe1   : > { %4222 = vst [vmem:[#allocation25_spill] sm:$0xff] %v2889_v45  ;;  %v304_v45 = vld [vmem:[%s2526_s6 + $0xf8] sm:$0xff] }
  0xe2   : > { %4263 = vst [vmem:[#allocation66_spill] sm:$0xff] %v3019_v10 }
  0xe3   : > { %337 = vst.msk [vmem:[#allocation2 + $0x189] sm:$0xff] %vm217_vm0, %v304_v45 }
  0xe4   : > { %841 = vrot.lane.b32.xlu2 %v2891_v14, %s2375_s7  ;;  %v2929_v14 = vld [vmem:[#allocation2 + $0x18] sm:$0xff] }
  0xe5   : > { %839 = vrot.lane.b32.xlu1 %v2893_v44, %s2375_s7  ;;  %4235 = vst [vmem:[#allocation38_spill] sm:$0xff] %v2929_v14 }
  0xe6   : > { %843 = vrot.lane.b32.xlu0 %v2895_v6, %s2375_s7  ;;  %v2903_v22 = vpop.permute.xlu2 %711 }
  0xe7   : > { %4225 = vst [vmem:[#allocation28_spill] sm:$0xff] %v2903_v22  ;;  %v2905_v31 = vpop.permute.xlu1 %691 }
  0xe8   : > { %4226 = vst [vmem:[#allocation29_spill] sm:$0xff] %v2905_v31  ;;  %v2907_v24 = vpop.permute.xlu0 %695  ;;  %v2927_v31 = vld [vmem:[#allocation2 + $0x20] sm:$0xff] }
  0xe9   : > { %4227 = vst [vmem:[#allocation30_spill] sm:$0xff] %v2907_v24 }
  0xea   : > { %4234 = vst [vmem:[#allocation37_spill] sm:$0xff] %v2927_v31 }
  0xec   : > { %847 = vrot.lane.b32.xlu2 %v2909_v23, %s2375_s7  ;;  %v2933_v23 = vld [vmem:[#allocation2 + $0x30] sm:$0xff] }
  0xed   : > { %845 = vrot.lane.b32.xlu1 %v2911_v43, %s2375_s7  ;;  %4236 = vst [vmem:[#allocation39_spill] sm:$0xff] %v2933_v23  ;;  %v2947_v43 = vld [vmem:[#allocation2 + $0x38] sm:$0xff] }
  0xee   : > { %849 = vrot.lane.b32.xlu0 %v2913_v32, %s2375_s7  ;;  %v2921_v22 = vpop.permute.xlu2 %717  ;;  %v2945_v32 = vld [vmem:[#allocation2 + $0x48] sm:$0xff]  ;;  %4241 = vst [vmem:[#allocation44_spill] sm:$0xff] %v2947_v43 }
  0xef   : > { %4231 = vst [vmem:[#allocation34_spill] sm:$0xff] %v2921_v22  ;;  %v2923_v6 = vpop.permute.xlu1 %697 }
  0xf0   : > { %4232 = vst [vmem:[#allocation35_spill] sm:$0xff] %v2923_v6  ;;  %v2925_v24 = vpop.permute.xlu0 %701 }
  0xf1   : > { %4233 = vst [vmem:[#allocation36_spill] sm:$0xff] %v2925_v24 }
  0xf2   : > { %4240 = vst [vmem:[#allocation43_spill] sm:$0xff] %v2945_v32 }
  0xf4   : > { %917 = vrot.lane.b32.xlu2 %v2927_v31, %s2376_s8  ;;  %v2951_v31 = vld [vmem:[#allocation2 + $0x50] sm:$0xff] }
  0xf5   : > { %915 = vrot.lane.b32.xlu1 %v2929_v14, %s2376_s8  ;;  %4242 = vst [vmem:[#allocation45_spill] sm:$0xff] %v2951_v31 }
  0xf6   : > { %919 = vrot.lane.b32.xlu0 %v2933_v23, %s2376_s8  ;;  %v2939_v22 = vpop.permute.xlu2 %787 }
  0xf7   : > { %4237 = vst [vmem:[#allocation40_spill] sm:$0xff] %v2939_v22  ;;  %v2941_v6 = vpop.permute.xlu1 %703 }
  0xf8   : > { %4238 = vst [vmem:[#allocation41_spill] sm:$0xff] %v2941_v6  ;;  %v2943_v24 = vpop.permute.xlu0 %707  ;;  %v2965_v6 = vld [vmem:[#allocation2 + $0x60] sm:$0xff] }
  0xf9   : > { %4239 = vst [vmem:[#allocation42_spill] sm:$0xff] %v2943_v24  ;;  %v2963_v24 = vld [vmem:[#allocation2 + $0x68] sm:$0xff] }
  0xfa   : > { %4246 = vst [vmem:[#allocation49_spill] sm:$0xff] %v2963_v24 }
  0xfb   : > { %4247 = vst [vmem:[#allocation50_spill] sm:$0xff] %v2965_v6 }
  0xfc   : > { %923 = vrot.lane.b32.xlu2 %v2945_v32, %s2376_s8  ;;  %v2969_v32 = vld [vmem:[#allocation2 + $0x78] sm:$0xff] }
  0xfd   : > { %921 = vrot.lane.b32.xlu1 %v2947_v43, %s2376_s8  ;;  %4248 = vst [vmem:[#allocation51_spill] sm:$0xff] %v2969_v32 }
  0xfe   : > { %925 = vrot.lane.b32.xlu0 %v2951_v31, %s2376_s8  ;;  %v2957_v22 = vpop.permute.xlu2 %793 }
  0xff   : > { %4243 = vst [vmem:[#allocation46_spill] sm:$0xff] %v2957_v22  ;;  %v2959_v14 = vpop.permute.xlu1 %709  ;;  %v349_v22 = vld [vmem:[#allocation2 + $0x80] sm:$0xff] }
 0x100   : > { %4244 = vst [vmem:[#allocation47_spill] sm:$0xff] %v2959_v14  ;;  %v2961_v23 = vpop.permute.xlu0 %713  ;;  %v2981_v14 = vld [vmem:[#allocation2 + $0x90] sm:$0xff] }
 0x101   : > { %4245 = vst [vmem:[#allocation48_spill] sm:$0xff] %v2961_v23 }
 0x102   : > { %4252 = vst [vmem:[#allocation55_spill] sm:$0xff] %v2981_v14 }
 0x104   : > { %929 = vrot.lane.b32.xlu2 %v2963_v24, %s2376_s8  ;;  %v2985_v24 = vld [vmem:[#allocation2 + $0x98] sm:$0xff] }
 0x105   : > { %927 = vrot.lane.b32.xlu1 %v2965_v6, %s2376_s8  ;;  %4253 = vst [vmem:[#allocation56_spill] sm:$0xff] %v2985_v24 }
 0x106   : > { %931 = vrot.lane.b32.xlu0 %v2969_v32, %s2376_s8  ;;  %v2975_v43 = vpop.permute.xlu2 %799  ;;  %v2996_v32 = vld [vmem:[#allocation2 + $0xb0] sm:$0xff] }
 0x107   : > { %4249 = vst [vmem:[#allocation52_spill] sm:$0xff] %v2975_v43  ;;  %v2977_v31 = vpop.permute.xlu1 %715 }
 0x108   : > { %4250 = vst [vmem:[#allocation53_spill] sm:$0xff] %v2977_v31  ;;  %v2979_v23 = vpop.permute.xlu0 %719  ;;  %v352_v31 = vld [vmem:[#allocation2 + $0xa8] sm:$0xff] }
 0x109   : > { %4251 = vst [vmem:[#allocation54_spill] sm:$0xff] %v2979_v23 }
 0x10a   : > { %4257 = vst [vmem:[#allocation60_spill] sm:$0xff] %v2996_v32 }
 0x10c   : > { %935 = vrot.lane.b32.xlu2 %v2981_v14, %s2376_s8  ;;  %v3000_v14 = vld [vmem:[#allocation2 + $0xc0] sm:$0xff] }
 0x10d   : > { %933 = vrot.lane.b32.xlu1 %v349_v22, %s2376_s8 }
 0x10e   : > { %937 = vrot.lane.b32.xlu0 %v2985_v24, %s2376_s8  ;;  %v2990_v6 = vpop.permute.xlu2 %805  ;;  %v3013_v24 = vld [vmem:[#allocation2 + $0xc8] sm:$0xff] }
 0x10f   : > { %4254 = vst [vmem:[#allocation57_spill] sm:$0xff] %v2990_v6  ;;  %v2992_v43 = vpop.permute.xlu1 %721 }
 0x110   : > { %4255 = vst [vmem:[#allocation58_spill] sm:$0xff] %v2992_v43  ;;  %v2994_v23 = vpop.permute.xlu0 %789 }
 0x111   : > { %4256 = vst [vmem:[#allocation59_spill] sm:$0xff] %v2994_v23  ;;  %v3011_v23 = vld [vmem:[#allocation2 + $0xd8] sm:$0xff] }
 0x112   : > { %4261 = vst [vmem:[#allocation64_spill] sm:$0xff] %v3011_v23 }
 0x113   : > { %4262 = vst [vmem:[#allocation65_spill] sm:$0xff] %v3013_v24 }
 0x114   : > { %941 = vrot.lane.b32.xlu2 %v2996_v32, %s2376_s8  ;;  %v303_v32 = vld [vmem:[%s2526_s6 + $0xf0] sm:$0xff]  ;;  %s191_s6 = scalar_lea.vmem [#allocation3], %s2210_s23 }
 0x115   : > { %939 = vrot.lane.b32.xlu1 %v352_v31, %s2376_s8  ;;  %336 = vst.msk [vmem:[#allocation2 + $0x181] sm:$0xff] %vm217_vm0, %v303_v32  ;;  %s2090_s7 = sshll.u32 %s191_s6, 4  ;;  %s2091_s7 = int_to_ptr.vmem [resolvable:$true] %s2090_s7 }
 0x116   : > { %943 = vrot.lane.b32.xlu0 %v3000_v14, %s2376_s8  ;;  %v3005_v22 = vpop.permute.xlu2 %811 }
 0x117   : > { %4258 = vst [vmem:[#allocation61_spill] sm:$0xff] %v3005_v22  ;;  %v3007_v6 = vpop.permute.xlu1 %791 }
 0x118   : > { %4259 = vst [vmem:[#allocation62_spill] sm:$0xff] %v3007_v6  ;;  %v3009_v43 = vpop.permute.xlu0 %795 }
 0x119   : > { %4260 = vst [vmem:[#allocation63_spill] sm:$0xff] %v3009_v43  ;;  %v3033_v43 = vld [vmem:[#allocation2 + $0xf8] sm:$0xff] }
 0x11a   : > { %4266 = vst [vmem:[#allocation69_spill] sm:$0xff] %v3033_v43 }
 0x11c   : > { %947 = vrot.lane.b32.xlu2 %v3011_v23, %s2376_s8  ;;  %v3035_v23 = vld [vmem:[#allocation2 + $0xf0] sm:$0xff] }
 0x11d   : > { %945 = vrot.lane.b32.xlu1 %v3013_v24, %s2376_s8  ;;  %4267 = vst [vmem:[#allocation70_spill] sm:$0xff] %v3035_v23  ;;  %v3039_v24 = vld [vmem:[#allocation2 + $0x108] sm:$0xff] }
 0x11e   : > { %949 = vrot.lane.b32.xlu0 %v3019_v10, %s2376_s8  ;;  %v3026_v31 = vpop.permute.xlu2 %817  ;;  %4268 = vst [vmem:[#allocation71_spill] sm:$0xff] %v3039_v24  ;;  %v3053_v10 = vld [vmem:[#allocation2 + $0x110] sm:$0xff] }
 0x11f   : > { %v3029_v22 = vpop.permute.xlu1 %797  ;;  %4273 = vst [vmem:[#allocation76_spill] sm:$0xff] %v3053_v10 }
 0x120   : > { %4264 = vst [vmem:[#allocation67_spill] sm:$0xff] %v3029_v22  ;;  %v3031_v6 = vpop.permute.xlu0 %801 }
 0x121   : > { %4265 = vst [vmem:[#allocation68_spill] sm:$0xff] %v3031_v6  ;;  %v3051_v6 = vld [vmem:[#allocation2 + $0x120] sm:$0xff] }
 0x122   : > { %4272 = vst [vmem:[#allocation75_spill] sm:$0xff] %v3051_v6 }
 0x124   : > { %953 = vrot.lane.b32.xlu2 %v3033_v43, %s2376_s8  ;;  %v3057_v43 = vld [vmem:[#allocation2 + $0x128] sm:$0xff] }
 0x125   : > { %951 = vrot.lane.b32.xlu1 %v3035_v23, %s2376_s8  ;;  %4274 = vst [vmem:[#allocation77_spill] sm:$0xff] %v3057_v43 }
 0x126   : > { %955 = vrot.lane.b32.xlu0 %v3039_v24, %s2376_s8  ;;  %v3045_v32 = vpop.permute.xlu2 %823  ;;  %v3071_v24 = vld [vmem:[#allocation2 + $0x138] sm:$0xff] }
 0x127   : > { %4269 = vst [vmem:[#allocation72_spill] sm:$0xff] %v3045_v32  ;;  %v3047_v45 = vpop.permute.xlu1 %803  ;;  %v3069_v32 = vld [vmem:[#allocation2 + $0x140] sm:$0xff] }
 0x128   : > { %4270 = vst [vmem:[#allocation73_spill] sm:$0xff] %v3047_v45  ;;  %v3049_v22 = vpop.permute.xlu0 %807 }
 0x129   : > { %4271 = vst [vmem:[#allocation74_spill] sm:$0xff] %v3049_v22 }
 0x12a   : > { %4278 = vst [vmem:[#allocation81_spill] sm:$0xff] %v3069_v32 }
 0x12b   : > { %4279 = vst [vmem:[#allocation82_spill] sm:$0xff] %v3071_v24 }
 0x12c   : > { %959 = vrot.lane.b32.xlu2 %v3051_v6, %s2376_s8  ;;  %v3075_v6 = vld [vmem:[#allocation2 + $0x150] sm:$0xff] }
 0x12d   : > { %957 = vrot.lane.b32.xlu1 %v3053_v10, %s2376_s8  ;;  %4280 = vst [vmem:[#allocation83_spill] sm:$0xff] %v3075_v6 }
 0x12e   : > { %961 = vrot.lane.b32.xlu0 %v3057_v43, %s2376_s8  ;;  %v3063_v23 = vpop.permute.xlu2 %829  ;;  %v3087_v43 = vld [vmem:[#allocation2 + $0x168] sm:$0xff] }
 0x12f   : > { %4275 = vst [vmem:[#allocation78_spill] sm:$0xff] %v3063_v23  ;;  %v3065_v45 = vpop.permute.xlu1 %809  ;;  %v3089_v23 = vld [vmem:[#allocation2 + $0x158] sm:$0xff] }
 0x130   : > { %4276 = vst [vmem:[#allocation79_spill] sm:$0xff] %v3065_v45  ;;  %v3067_v22 = vpop.permute.xlu0 %813 }
 0x131   : > { %4277 = vst [vmem:[#allocation80_spill] sm:$0xff] %v3067_v22 }
 0x132   : > { %4284 = vst [vmem:[#allocation87_spill] sm:$0xff] %v3089_v23 }
 0x134   : > { %965 = vrot.lane.b32.xlu2 %v3069_v32, %s2376_s8  ;;  %v3093_v32 = vld [vmem:[#allocation2 + $0x170] sm:$0xff] }
 0x135   : > { %963 = vrot.lane.b32.xlu1 %v3071_v24, %s2376_s8  ;;  %4285 = vst [vmem:[#allocation88_spill] sm:$0xff] %v3093_v32 }
 0x136   : > { %967 = vrot.lane.b32.xlu0 %v3075_v6, %s2376_s8  ;;  %v3081_v10 = vpop.permute.xlu2 %835 }
 0x137   : > { %4281 = vst [vmem:[#allocation84_spill] sm:$0xff] %v3081_v10  ;;  %v3083_v45 = vpop.permute.xlu1 %815  ;;  %v3105_v10 = vld [vmem:[#allocation2 + $0x188] sm:$0xff] }
 0x138   : > { %4282 = vst [vmem:[#allocation85_spill] sm:$0xff] %v3083_v45  ;;  %v3085_v22 = vpop.permute.xlu0 %819 }
 0x139   : > { %4283 = vst [vmem:[#allocation86_spill] sm:$0xff] %v3085_v22  ;;  %v3107_v22 = vld [vmem:[#allocation2 + $0x180] sm:$0xff] }
 0x13a   : > { %4288 = vst [vmem:[#allocation91_spill] sm:$0xff] %v3105_v10 }
 0x13b   : > { %4289 = vst [vmem:[#allocation92_spill] sm:$0xff] %v3107_v22 }
 0x13c   : > { %971 = vrot.lane.b32.xlu2 %v3087_v43, %s2376_s8 }
 0x13d   : > { %969 = vrot.lane.b32.xlu1 %v3089_v23, %s2376_s8 }
 0x13e   : > { %973 = vrot.lane.b32.xlu0 %v3093_v32, %s2376_s8  ;;  %v3099_v24 = vpop.permute.xlu2 %841 }
 0x13f   : > { %v3101_v45 = vpop.permute.xlu1 %821 }
 0x140   : > { %4286 = vst [vmem:[#allocation89_spill] sm:$0xff] %v3101_v45  ;;  %v3103_v6 = vpop.permute.xlu0 %825 }
 0x141   : > { %4287 = vst [vmem:[#allocation90_spill] sm:$0xff] %v3103_v6 }
 0x144   : > { %977 = vrot.lane.b32.xlu2 %v3105_v10, %s2376_s8 }
 0x145   : > { %975 = vrot.lane.b32.xlu1 %v3107_v22, %s2376_s8  ;;  %s2092_s8 = sshll.u32 %s2088_s5, 4  ;;  %s2093_s8 = int_to_ptr.hbm [resolvable:$true] %s2092_s8 }
 0x146   : > { %v3113_v23 = vpop.permute.xlu2 %847  ;;  %1043 = vrot.lane.b32.xlu0 %v2558_v5, %s2377_s9 }
 0x147   : > { %v3117_v32 = vpop.permute.xlu1 %827 }
 0x148   : > { %v3119_v45 = vpop.permute.xlu0 %831 }
 0x14c   : > { %1047 = vrot.lane.b32.xlu2 %v2552_v4, %s2377_s9 }
 0x14d   : > { %1045 = vrot.lane.b32.xlu1 %v2610_v19, %s2377_s9 }
 0x14e   : > { %1049 = vrot.lane.b32.xlu0 %v2604_v17, %s2377_s9  ;;  %v3127_v22 = vpop.permute.xlu2 %917 }
 0x14f   : > { %v3129_v6 = vpop.permute.xlu1 %833 }
 0x150   : > { %v3131_v10 = vpop.permute.xlu0 %837 }
 0x154   : > { %1053 = vrot.lane.b32.xlu2 %v2632_v28, %s2377_s9 }
 0x155   : > { %1051 = vrot.lane.b32.xlu1 %v2616_v21, %s2377_s9 }
 0x156   : > { %1055 = vrot.lane.b32.xlu0 %v2628_v26, %s2377_s9  ;;  %v3139_v4 = vpop.permute.xlu2 %923 }
 0x157   : > { %v3141_v5 = vpop.permute.xlu1 %839 }
 0x158   : > { %v3143_v17 = vpop.permute.xlu0 %843 }
 0x15c   : > { %1059 = vrot.lane.b32.xlu2 %v2655_v35, %s2377_s9 }
 0x15d   : > { %1057 = vrot.lane.b32.xlu1 %v2636_v30, %s2377_s9 }
 0x15e   : > { %1061 = vrot.lane.b32.xlu0 %v2653_v34, %s2377_s9  ;;  %v3151_v19 = vpop.permute.xlu2 %929 }
 0x15f   : > { %v3153_v21 = vpop.permute.xlu1 %845 }
 0x160   : > { %v3155_v26 = vpop.permute.xlu0 %849 }
 0x161   : > { %4290 = vst [vmem:[#allocation93_spill] sm:$0xff] %v3155_v26 }
 0x164   : > { %1065 = vrot.lane.b32.xlu2 %v2673_v41, %s2377_s9 }
 0x165   : > { %1063 = vrot.lane.b32.xlu1 %v2657_v36, %s2377_s9 }
 0x166   : > { %1067 = vrot.lane.b32.xlu0 %v2671_v40, %s2377_s9  ;;  %v3163_v28 = vpop.permute.xlu2 %935 }
 0x167   : > { %4291 = vst [vmem:[#allocation94_spill] sm:$0xff] %v3163_v28  ;;  %v3165_v30 = vpop.permute.xlu1 %915  ;;  %v3243_v28 = vld [vmem:[#allocation2 + $0x189] sm:$0xff] }
 0x168   : > { %v3167_v34 = vpop.permute.xlu0 %919 }
 0x16c   : > { %1071 = vrot.lane.b32.xlu2 %v2691_v47, %s2377_s9 }
 0x16d   : > { %1069 = vrot.lane.b32.xlu1 %v2675_v42, %s2377_s9 }
 0x16e   : > { %1073 = vrot.lane.b32.xlu0 %v2689_v46, %s2377_s9  ;;  %v3175_v35 = vpop.permute.xlu2 %941 }
 0x16f   : > { %4292 = vst [vmem:[#allocation95_spill] sm:$0xff] %v3175_v35  ;;  %v3177_v36 = vpop.permute.xlu1 %921  ;;  %v4309_v35 = vld [vmem:[#allocation25_spill] sm:$0xff] }
 0x170   : > { %v3179_v40 = vpop.permute.xlu0 %925 }
 0x174   : > { %1077 = vrot.lane.b32.xlu2 %v2705_v51, %s2377_s9 }
 0x175   : > { %1075 = vrot.lane.b32.xlu1 %v2693_v48, %s2377_s9 }
 0x176   : > { %1079 = vrot.lane.b32.xlu0 %v2703_v50, %s2377_s9  ;;  %v3187_v41 = vpop.permute.xlu2 %947 }
 0x177   : > { %v3189_v42 = vpop.permute.xlu1 %927 }
 0x178   : > { %4293 = vst [vmem:[#allocation96_spill] sm:$0xff] %v3189_v42  ;;  %v3191_v46 = vpop.permute.xlu0 %931  ;;  %v4328_v42 = vld [vmem:[#allocation14_spill] sm:$0xff] }
 0x179   : > { %4294 = vst [vmem:[#allocation97_spill] sm:$0xff] %v3191_v46 }
 0x17c   : > { %1083 = vrot.lane.b32.xlu2 %v2717_v54, %s2377_s9 }
 0x17d   : > { %1081 = vrot.lane.b32.xlu1 %v2707_v52, %s2377_s9 }
 0x17e   : > { %1085 = vrot.lane.b32.xlu0 %v2715_v53, %s2377_s9  ;;  %v3199_v47 = vpop.permute.xlu2 %953 }
 0x17f   : > { %v3201_v48 = vpop.permute.xlu1 %933 }
 0x180   : > { %4295 = vst [vmem:[#allocation98_spill] sm:$0xff] %v3201_v48  ;;  %v3203_v50 = vpop.permute.xlu0 %937  ;;  %v532_v48 = vld [vmem:[#allocation2 + $0x38] sm:$0xff] }
 0x181   : > { %4296 = vst [vmem:[#allocation99_spill] sm:$0xff] %v3203_v50 }
 0x184   : > { %1089 = vrot.lane.b32.xlu2 %v2729_v57, %s2377_s9  ;;  %v3229_v57 = vld [vmem:[#allocation2 + $0x181] sm:$0xff] }
 0x185   : > { %1087 = vrot.lane.b32.xlu1 %v2719_v55, %s2377_s9 }
 0x186   : > { %1091 = vrot.lane.b32.xlu0 %v2727_v56, %s2377_s9  ;;  %v3211_v51 = vpop.permute.xlu2 %959 }
 0x187   : > { %v3213_v52 = vpop.permute.xlu1 %939 }
 0x188   : > { %4297 = vst [vmem:[#allocation100_spill] sm:$0xff] %v3213_v52  ;;  %v3215_v53 = vpop.permute.xlu0 %943 }
 0x189   : > { %4298 = vst [vmem:[#allocation101_spill] sm:$0xff] %v3215_v53 }
 0x18c   : > { %1095 = vrot.lane.b32.xlu2 %v2741_v60, %s2377_s9 }
 0x18d   : > { %1093 = vrot.lane.b32.xlu1 %v2731_v58, %s2377_s9 }
 0x18e   : > { %1097 = vrot.lane.b32.xlu0 %v2739_v59, %s2377_s9  ;;  %v3223_v54 = vpop.permute.xlu2 %965 }
 0x18f   : > { %v3225_v55 = vpop.permute.xlu1 %945 }
 0x190   : > { %v3227_v56 = vpop.permute.xlu0 %949 }
 0x194   : > { %1101 = vrot.lane.b32.xlu2 %v2751_v63, %s2377_s9 }
 0x195   : > { %1099 = vrot.lane.b32.xlu1 %v2743_v61, %s2377_s9 }
 0x196   : > { %1103 = vrot.lane.b32.xlu0 %v3229_v57, %s2377_s9  ;;  %v3237_v58 = vpop.permute.xlu2 %971 }
 0x197   : > { %v3239_v59 = vpop.permute.xlu1 %951 }
 0x198   : > { %v3241_v60 = vpop.permute.xlu0 %955 }
 0x19c   : > { %1171 = vrot.lane.b32.xlu2 %v2759_v2, %s2378_s10 }
 0x19d   : > { %1105 = vrot.lane.b32.xlu1 %v3243_v28, %s2377_s9  ;;  %s2069_s9 = scalar_lea.sflag [#allocation4], %s189_s22 }
 0x19e   : > { %1173 = vrot.lane.b32.xlu0 %v2757_v1, %s2378_s10  ;;  %v3251_v61 = vpop.permute.xlu2 %977 }
 0x19f   : > { %4299 = vst [vmem:[#allocation102_spill] sm:$0xff] %v3251_v61  ;;  %v3253_v63 = vpop.permute.xlu1 %957 }
 0x1a0   : > { %v3255_v50 = vpop.permute.xlu0 %961 }
 0x1a4   : > { %1177 = vrot.lane.b32.xlu2 %v2773_v8, %s2378_s10 }
 0x1a5   : > { %1175 = vrot.lane.b32.xlu1 %v2761_v3, %s2378_s10 }
 0x1a6   : > { %1179 = vrot.lane.b32.xlu0 %v2771_v7, %s2378_s10  ;;  %v3263_v2 = vpop.permute.xlu2 %1047 }
 0x1a7   : > { %v3265_v52 = vpop.permute.xlu1 %963 }
 0x1a8   : > { %v3267_v1 = vpop.permute.xlu0 %967 }
 0x1ac   : > { %1183 = vrot.lane.b32.xlu2 %v2787_v12, %s2378_s10 }
 0x1ad   : > { %1181 = vrot.lane.b32.xlu1 %v2775_v9, %s2378_s10 }
 0x1ae   : > { %1185 = vrot.lane.b32.xlu0 %v2785_v11, %s2378_s10  ;;  %v3275_v8 = vpop.permute.xlu2 %1053 }
 0x1af   : > { %4300 = vst [vmem:[#allocation103_spill] sm:$0xff] %v3275_v8  ;;  %v3277_v3 = vpop.permute.xlu1 %969 }
 0x1b0   : > { %v3279_v7 = vpop.permute.xlu0 %973 }
 0x1b4   : > { %1189 = vrot.lane.b32.xlu2 %v2803_v18, %s2378_s10 }
 0x1b5   : > { %1187 = vrot.lane.b32.xlu1 %v2789_v13, %s2378_s10 }
 0x1b6   : > { %1191 = vrot.lane.b32.xlu0 %v2801_v16, %s2378_s10  ;;  %v3287_v12 = vpop.permute.xlu2 %1059 }
 0x1b7   : > { %4301 = vst [vmem:[#allocation104_spill] sm:$0xff] %v3287_v12  ;;  %v3289_v9 = vpop.permute.xlu1 %975  ;;  %v531_v12 = vld [vmem:[#allocation2 + $0x30] sm:$0xff] }
 0x1b8   : > { %v3291_v11 = vpop.permute.xlu0 %1043 }
 0x1bc   : > { %1195 = vrot.lane.b32.xlu2 %v2821_v27, %s2378_s10 }
 0x1bd   : > { %1193 = vrot.lane.b32.xlu1 %v2805_v20, %s2378_s10 }
 0x1be   : > { %1197 = vrot.lane.b32.xlu0 %v2819_v25, %s2378_s10  ;;  %v3299_v18 = vpop.permute.xlu2 %1065 }
 0x1bf   : > { %4302 = vst [vmem:[#allocation105_spill] sm:$0xff] %v3299_v18  ;;  %v3301_v13 = vpop.permute.xlu1 %1045  ;;  %v4308_v18 = vld [vmem:[#allocation22_spill] sm:$0xff] }
 0x1c0   : > { %v3303_v16 = vpop.permute.xlu0 %1049 }
 0x1c4   : > { %1201 = vrot.lane.b32.xlu2 %v2839_v38, %s2378_s10 }
 0x1c5   : > { %1199 = vrot.lane.b32.xlu1 %v2823_v29, %s2378_s10 }
 0x1c6   : > { %1203 = vrot.lane.b32.xlu0 %v2837_v37, %s2378_s10  ;;  %v3311_v27 = vpop.permute.xlu2 %1071 }
 0x1c7   : > { %4303 = vst [vmem:[#allocation106_spill] sm:$0xff] %v3311_v27  ;;  %v3313_v20 = vpop.permute.xlu1 %1051 }
 0x1c8   : > { %v3315_v25 = vpop.permute.xlu0 %1055 }
 0x1c9   : > { %4304 = vst [vmem:[#allocation107_spill] sm:$0xff] %v3315_v25 }
 0x1cc   : > { %1207 = vrot.lane.b32.xlu2 %v2857_v62, %s2378_s10 }
 0x1cd   : > { %1205 = vrot.lane.b32.xlu1 %v2841_v39, %s2378_s10 }
 0x1ce   : > { %1209 = vrot.lane.b32.xlu0 %v2855_v49, %s2378_s10  ;;  %v3323_v38 = vpop.permute.xlu2 %1077 }
 0x1cf   : > { %v3325_v29 = vpop.permute.xlu1 %1057 }
 0x1d0   : > { %v3327_v37 = vpop.permute.xlu0 %1061 }
 0x1d1   : > { %4305 = vst [vmem:[#allocation108_spill] sm:$0xff] %v3327_v37 }
 0x1d4   : > { %1213 = vrot.lane.b32.xlu2 %v2875_v33, %s2378_s10  ;;  %v4310_v33 = vld [vmem:[#allocation60_spill] sm:$0xff] }
 0x1d5   : > { %1211 = vrot.lane.b32.xlu1 %v2859_v0, %s2378_s10  ;;  %v1666_v27 = vsel %vm217_vm0, %v4310_v33, %v4309_v35  ;;  %v4311_v0 = vld [vmem:[#allocation26_spill] sm:$0xff]  ;;  %v4313_v35 = vld [vmem:[#allocation32_spill] sm:$0xff]  ;;  %v4314_v33 = vld [vmem:[#allocation29_spill] sm:$0xff] }
 0x1d6   : > { %1215 = vrot.lane.b32.xlu0 %v2873_v15, %s2378_s10  ;;  %v3335_v62 = vpop.permute.xlu2 %1083 }
 0x1d7   : > { %v3337_v39 = vpop.permute.xlu1 %1063 }
 0x1d8   : > { %4306 = vst [vmem:[#allocation109_spill] sm:$0xff] %v3337_v39  ;;  %v3339_v49 = vpop.permute.xlu0 %1067  ;;  %v1699_v39 = vsel %vm1683_vm2, %v1666_v27, %v3026_v31  ;;  %v4315_v31 = vld [vmem:[#allocation27_spill] sm:$0xff]  ;;  %v4316_v27 = vld [vmem:[#allocation86_spill] sm:$0xff] }
 0x1d9   : > { %4307 = vst [vmem:[#allocation110_spill] sm:$0xff] %v3339_v49 }
 0x1dc   : > { %1219 = vrot.lane.b32.xlu2 %v2893_v44, %s2378_s10  ;;  %v1732_v44 = vsel %vm1716_vm3, %v1699_v39, %v3225_v55  ;;  %v4317_v55 = vld [vmem:[#allocation31_spill] sm:$0xff] }
 0x1dd   : > { %1217 = vrot.lane.b32.xlu1 %v4308_v18, %s2378_s10 }
 0x1de   : > { %1221 = vrot.lane.b32.xlu0 %v4311_v0, %s2378_s10  ;;  %v3350_v15 = vpop.permute.xlu2 %1089  ;;  %v1667_v0 = vsel %vm217_vm0, %v3000_v14, %v4314_v33  ;;  %v3381_v14 = vld [vmem:[#allocation2 + $0x182] sm:$0xff]  ;;  %v3383_v33 = vld [vmem:[#allocation2 + $0x18a] sm:$0xff] }
 0x1df   : > { %v3354_v49 = vpop.permute.xlu1 %1069 }
 0x1e0   : > { %4312 = vst [vmem:[#allocation22_spill] sm:$0xff] %v3354_v49  ;;  %v1074_v18 = vpop.permute.xlu0 %1073  ;;  %v1700_v49 = vsel %vm1683_vm2, %v1667_v0, %v4316_v27  ;;  %v4318_v0 = vld [vmem:[#allocation33_spill] sm:$0xff] }
 0x1e1   : > { %v3359_v53 = vsel %vm1749_vm4, %v1732_v44, %v1074_v18  ;;  %v1733_v44 = vsel %vm1716_vm3, %v1700_v49, %v3187_v41  ;;  %v4320_v27 = vld [vmem:[#allocation69_spill] sm:$0xff] }
 0x1e4   : > { %1225 = vrot.lane.b32.xlu2 %v4313_v35, %s2378_s10 }
 0x1e5   : > { %1223 = vrot.lane.b32.xlu1 %v4315_v31, %s2378_s10  ;;  %v4319_v31 = vld [vmem:[#allocation36_spill] sm:$0xff] }
 0x1e6   : > { %1227 = vrot.lane.b32.xlu0 %v4317_v55, %s2378_s10  ;;  %v3372_v39 = vpop.permute.xlu2 %1095  ;;  %v1672_v41 = vsel %vm217_vm0, %v4320_v27, %v4319_v31  ;;  %v4321_v55 = vld [vmem:[#allocation78_spill] sm:$0xff]  ;;  %v4322_v31 = vld [vmem:[#allocation41_spill] sm:$0xff]  ;;  %v4323_v27 = vld [vmem:[#allocation71_spill] sm:$0xff] }
 0x1e7   : > { %v1076_v18 = vpop.permute.xlu1 %1075  ;;  %v1673_v25 = vsel %vm217_vm0, %v4323_v27, %v4322_v31 }
 0x1e8   : > { %v3377_v35 = vsel %vm1749_vm4, %v1733_v44, %v1076_v18  ;;  %v3379_v61 = vpop.permute.xlu0 %1079  ;;  %v1705_v44 = vsel %vm1683_vm2, %v1672_v41, %v4321_v55  ;;  %v4324_v41 = vld [vmem:[#allocation42_spill] sm:$0xff]  ;;  %v4325_v55 = vld [vmem:[#allocation75_spill] sm:$0xff] }
 0x1e9   : > { %v1738_v26 = vsel %vm1716_vm3, %v1705_v44, %v3253_v63  ;;  %v1675_v46 = vsel %vm217_vm0, %v4325_v55, %v4324_v41  ;;  %v1706_v63 = vsel %vm1683_vm2, %v1673_v25, %v3119_v45  ;;  %v4327_v44 = vld [vmem:[#allocation84_spill] sm:$0xff] }
 0x1ea   : > { %v1739_v31 = vsel %vm1716_vm3, %v1706_v63, %v3211_v51  ;;  %v535_v25 = vld [vmem:[#allocation2 + $0x60] sm:$0xff]  ;;  %v4331_v51 = vld [vmem:[#allocation47_spill] sm:$0xff]  ;;  %v4332_v63 = vld [vmem:[#allocation77_spill] sm:$0xff] }
 0x1ec   : > { %1231 = vrot.lane.b32.xlu2 %v3381_v14, %s2378_s10 }
 0x1ed   : > { %1229 = vrot.lane.b32.xlu1 %v4318_v0, %s2378_s10 }
 0x1ee   : > { %1233 = vrot.lane.b32.xlu0 %v3383_v33, %s2378_s10  ;;  %v3394_v49 = vpop.permute.xlu2 %1101  ;;  %s2323_s10 = sshra.s32 %s2093_s8, 4  ;;  %s2324_s10 = int_to_ptr.hbm [resolvable:$true] %s2323_s10 }
 0x1ef   : > { %v3398_v18 = vpop.permute.xlu1 %1081  ;;  %s2325_s19 = scalar_lea.hbm %s2324_s10, 16  ;;  %p2330_p0 = scmp.lt.s32.totalorder %s2324_s10, %s4158_s2 }
 0x1f0   : > { %v1086_v37 = vpop.permute.xlu0 %1085  ;;  %p2326_p11 = scmp.ne.s32.totalorder %s2324_s10, %s2325_s19 }
 0x1f1   : > { %v3403_v0 = vsel %vm1749_vm4, %v1738_v26, %v1086_v37  ;;  %v4326_v26 = vld [vmem:[#allocation43_spill] sm:$0xff] }
 0x1f2   : > { %p2327_p12 = pnand %p2326_p11, %p2445_p5 }
 0x1f4   : > { %1301 = vrot.lane.b32.xlu2 %v532_v48, %s2379_s11  ;;  %v1708_v48 = vsel %vm1683_vm2, %v1675_v46, %v4327_v44  ;;  %v4330_v46 = vld [vmem:[#allocation46_spill] sm:$0xff]  ;;  %p2328_p13 = pneg %p2327_p12 }
 0x1f5   : > { %1299 = vrot.lane.b32.xlu1 %v531_v12, %s2379_s11  ;;  %v1741_v12 = vsel %vm1716_vm3, %v1708_v48, %v3265_v52  ;;  %v1676_v52 = vsel %vm217_vm0, %v4332_v63, %v4331_v51 }
 0x1f6   : > { %1303 = vrot.lane.b32.xlu0 %v4326_v26, %s2379_s11  ;;  %v3417_v37 = vpop.permute.xlu2 %1171  ;;  %v4329_v26 = vld [vmem:[#allocation37_spill] sm:$0xff] }
 0x1f7   : > { %v1088_v27 = vpop.permute.xlu1 %1087  ;;  %v1654_v8 = vsel %vm217_vm0, %v4329_v26, %v4328_v42  ;;  %v1709_v42 = vsel %vm1683_vm2, %v1676_v52, %v3131_v10  ;;  %v4336_v26 = vld [vmem:[#allocation49_spill] sm:$0xff] }
 0x1f8   : > { %v3426_v41 = vsel %vm1749_vm4, %v1739_v31, %v1088_v27  ;;  %v1092_v55 = vpop.permute.xlu0 %1091  ;;  %v1687_v44 = vsel %vm1683_vm2, %v1654_v8, %v4330_v46  ;;  %v4333_v31 = vld [vmem:[#allocation45_spill] sm:$0xff]  ;;  %v4334_v27 = vld [vmem:[#allocation48_spill] sm:$0xff]  ;;  %v1742_v46 = vsel %vm1716_vm3, %v1709_v42, %v3223_v54 }
 0x1f9   : > { %v3429_v45 = vsel %vm1749_vm4, %v1741_v12, %v1092_v55  ;;  %v1720_v48 = vsel %vm1716_vm3, %v1687_v44, %v3177_v36  ;;  %v4335_v12 = vld [vmem:[#allocation81_spill] sm:$0xff] }
 0x1fa   : > { %v1678_v55 = vsel %vm217_vm0, %v4335_v12, %v4334_v27  ;;  %v1753_v8 = vsel %vm1749_vm4, %v1720_v48, %v3303_v16  ;;  %v538_v48 = vld [vmem:[#allocation2 + $0x80] sm:$0xff]  ;;  %v4338_v27 = vld [vmem:[#allocation83_spill] sm:$0xff] }
 0x1fb   : > { %v1711_v36 = vsel %vm1683_vm2, %v1678_v55, %v3099_v24  ;;  %v4337_v24 = vld [vmem:[#allocation53_spill] sm:$0xff]  ;;  %v4339_v12 = vld [vmem:[#allocation51_spill] sm:$0xff]  ;;  %v4340_v55 = vld [vmem:[#allocation54_spill] sm:$0xff] }
 0x1fc   : > { %1307 = vrot.lane.b32.xlu2 %v535_v25, %s2379_s11  ;;  %v1744_v10 = vsel %vm1716_vm3, %v1711_v36, %v3277_v3  ;;  %v1679_v54 = vsel %vm217_vm0, %v4338_v27, %v4337_v24  ;;  %v1681_v3 = vsel %vm217_vm0, %v3087_v43, %v4340_v55  ;;  %v4342_v24 = vld [vmem:[#allocation66_spill] sm:$0xff]  ;;  %v610_v55 = vld [vmem:[#allocation2 + $0xe2] sm:$0xff] }
 0x1fd   : > { %1305 = vrot.lane.b32.xlu1 %v4333_v31, %s2379_s11  ;;  %v1712_v42 = vsel %vm1683_vm2, %v1679_v54, %v3143_v17  ;;  %v1714_v36 = vsel %vm1683_vm2, %v1681_v3, %v3113_v23  ;;  %v4343_v23 = vld [vmem:[#allocation56_spill] sm:$0xff] }
 0x1fe   : > { %1309 = vrot.lane.b32.xlu0 %v4336_v26, %s2379_s11  ;;  %v1178_v25 = vpop.permute.xlu2 %1177  ;;  %v594_v54 = vld [vmem:[#allocation2 + $0x1a1] sm:$0xff] }
 0x1ff   : > { %v3458_v44 = vsel %vm1782_vm5, %v1753_v8, %v1178_v25  ;;  %v1094_v51 = vpop.permute.xlu1 %1093  ;;  %v4341_v8 = vld [vmem:[#allocation55_spill] sm:$0xff] }
 0x200   : > { %v3463_v16 = vsel %vm1749_vm4, %v1742_v46, %v1094_v51  ;;  %v1098_v63 = vpop.permute.xlu0 %1097  ;;  %v1745_v46 = vsel %vm1716_vm3, %v1712_v42, %v3237_v58 }
 0x201   : > { %v3466_v52 = vsel %vm1749_vm4, %v1744_v10, %v1098_v63  ;;  %v1747_v10 = vsel %vm1716_vm3, %v1714_v36, %v3289_v9  ;;  %v626_v36 = vld [vmem:[#allocation2 + $0x1a2] sm:$0xff] }
 0x204   : > { %1313 = vrot.lane.b32.xlu2 %v538_v48, %s2379_s11  ;;  %v562_v48 = vld [vmem:[#allocation2 + $0x1a0] sm:$0xff] }
 0x205   : > { %1311 = vrot.lane.b32.xlu1 %v4339_v12, %s2379_s11  ;;  %v578_v12 = vld [vmem:[#allocation2 + $0xe1] sm:$0xff] }
 0x206   : > { %1315 = vrot.lane.b32.xlu0 %v4341_v8, %s2379_s11  ;;  %v3481_v25 = vpop.permute.xlu2 %1183 }
 0x207   : > { %v1100_v51 = vpop.permute.xlu1 %1099 }
 0x208   : > { %v3490_v43 = vsel %vm1749_vm4, %v1745_v46, %v1100_v51  ;;  %v1104_v63 = vpop.permute.xlu0 %1103  ;;  %v561_v46 = vld [vmem:[#allocation2 + $0x198] sm:$0xff]  ;;  %v4347_v51 = vld [vmem:[#allocation64_spill] sm:$0xff] }
 0x209   : > { %v3493_v17 = vsel %vm1749_vm4, %v1747_v10, %v1104_v63 }
 0x20c   : > { %1329 = vrot.lane.b32.xlu2 %v4342_v24, %s2379_s11 }
 0x20d   : > { %1317 = vrot.lane.b32.xlu1 %v4343_v23, %s2379_s11 }
 0x20e   : > { %1361 = vrot.lane.b32.xlu0 %v562_v48, %s2379_s11  ;;  %v3500_v58 = vpop.permute.xlu2 %1189 }
 0x20f   : > { %4344 = vst [vmem:[#allocation25_spill] sm:$0xff] %v3500_v58  ;;  %v3502_v27 = vpop.permute.xlu1 %1105  ;;  %v4350_v58 = vld [vmem:[#allocation72_spill] sm:$0xff] }
 0x210   : > { %4345 = vst [vmem:[#allocation60_spill] sm:$0xff] %v3502_v27  ;;  %v3504_v9 = vpop.permute.xlu0 %1173  ;;  %v609_v27 = vld [vmem:[#allocation2 + $0xda] sm:$0xff] }
 0x214   : > { %1489 = vrot.lane.b32.xlu2 %v594_v54, %s2380_s12  ;;  %v593_v54 = vld [vmem:[#allocation2 + $0x199] sm:$0xff] }
 0x215   : > { %1457 = vrot.lane.b32.xlu1 %v578_v12, %s2380_s12  ;;  %v577_v12 = vld [vmem:[#allocation2 + $0xd9] sm:$0xff] }
 0x216   : > { %1585 = vrot.lane.b32.xlu0 %v610_v55, %s2381_s13  ;;  %v3509_v3 = vpop.permute.xlu2 %1195  ;;  %v4349_v55 = vld [vmem:[#allocation30_spill] sm:$0xff] }
 0x217   : > { %4346 = vst [vmem:[#allocation26_spill] sm:$0xff] %v3509_v3  ;;  %v3511_v42 = vpop.permute.xlu1 %1175  ;;  %v1669_v3 = vsel %vm217_vm0, %v4347_v51, %v4349_v55 }
 0x218   : > { %v3513_v8 = vpop.permute.xlu0 %1179 }
 0x21c   : > { %1327 = vrot.lane.b32.xlu2 %v4347_v51, %s2379_s11 }
 0x21d   : > { %1617 = vrot.lane.b32.xlu1 %v626_v36, %s2381_s13  ;;  %v1702_v36 = vsel %vm1683_vm2, %v1669_v3, %v4350_v58  ;;  %v544_v58 = vld [vmem:[#allocation2 + $0xc8] sm:$0xff]  ;;  %v625_v3 = vld [vmem:[#allocation2 + $0x19a] sm:$0xff] }
 0x21e   : > { %1359 = vrot.lane.b32.xlu0 %v561_v46, %s2379_s11  ;;  %v1202_v10 = vpop.permute.xlu2 %1201 }
 0x21f   : > { %v3521_v63 = vsel %vm1782_vm5, %v3359_v53, %v1202_v10  ;;  %v3523_v48 = vpop.permute.xlu1 %1181  ;;  %v1735_v53 = vsel %vm1716_vm3, %v1702_v36, %v3239_v59  ;;  %v4352_v59 = vld [vmem:[#allocation91_spill] sm:$0xff]  ;;  %v576_v36 = vld [vmem:[#allocation2 + $0xc9] sm:$0xff] }
 0x220   : > { %4348 = vst [vmem:[#allocation32_spill] sm:$0xff] %v3521_v63  ;;  %v3525_v23 = vpop.permute.xlu0 %1185  ;;  %v1768_v46 = vsel %vm1749_vm4, %v1735_v53, %v3379_v61  ;;  %v608_v53 = vld [vmem:[#allocation2 + $0xca] sm:$0xff] }
 0x224   : > { %1487 = vrot.lane.b32.xlu2 %v593_v54, %s2380_s12 }
 0x225   : > { %1455 = vrot.lane.b32.xlu1 %v577_v12, %s2380_s12 }
 0x226   : > { %1583 = vrot.lane.b32.xlu0 %v609_v27, %s2381_s13  ;;  %v1208_v10 = vpop.permute.xlu2 %1207 }
 0x227   : > { %v3540_v63 = vsel %vm1782_vm5, %v1768_v46, %v1208_v10  ;;  %v3542_v51 = vpop.permute.xlu1 %1187 }
 0x228   : > { %4351 = vst [vmem:[#allocation29_spill] sm:$0xff] %v3540_v63  ;;  %v3544_v55 = vpop.permute.xlu0 %1191  ;;  %v4355_v63 = vld [vmem:[#allocation65_spill] sm:$0xff] }
 0x22c   : > { %1325 = vrot.lane.b32.xlu2 %v544_v58, %s2379_s11 }
 0x22d   : > { %1615 = vrot.lane.b32.xlu1 %v625_v3, %s2381_s13 }
 0x22e   : > { %1357 = vrot.lane.b32.xlu0 %v4352_v59, %s2379_s11  ;;  %v1214_v61 = vpop.permute.xlu2 %1213  ;;  %v543_v59 = vld [vmem:[#allocation2 + $0xc0] sm:$0xff] }
 0x22f   : > { %v3552_v27 = vsel %vm1782_vm5, %v3403_v0, %v1214_v61  ;;  %v3554_v54 = vpop.permute.xlu1 %1193  ;;  %v4354_v61 = vld [vmem:[#allocation16_spill] sm:$0xff] }
 0x230   : > { %4353 = vst [vmem:[#allocation27_spill] sm:$0xff] %v3552_v27  ;;  %v3556_v12 = vpop.permute.xlu0 %1197  ;;  %v4358_v27 = vld [vmem:[#allocation90_spill] sm:$0xff] }
 0x234   : > { %1485 = vrot.lane.b32.xlu2 %v3243_v28, %s2380_s12  ;;  %v1668_v28 = vsel %vm217_vm0, %v4355_v63, %v4354_v61  ;;  %v4359_v63 = vld [vmem:[#allocation92_spill] sm:$0xff] }
 0x235   : > { %1453 = vrot.lane.b32.xlu1 %v576_v36, %s2380_s12  ;;  %v4356_v36 = vld [vmem:[#allocation35_spill] sm:$0xff] }
 0x236   : > { %1581 = vrot.lane.b32.xlu0 %v608_v53, %s2381_s13  ;;  %v1220_v46 = vpop.permute.xlu2 %1219  ;;  %v1670_v53 = vsel %vm217_vm0, %v4342_v24, %v4356_v36 }
 0x237   : > { %v3564_v10 = vsel %vm1782_vm5, %v3429_v45, %v1220_v46  ;;  %v3566_v0 = vpop.permute.xlu1 %1199  ;;  %v4357_v45 = vld [vmem:[#allocation89_spill] sm:$0xff] }
 0x238   : > { %v1204_v58 = vpop.permute.xlu0 %1203  ;;  %v1701_v46 = vsel %vm1683_vm2, %v1668_v28, %v4357_v45  ;;  %v575_v45 = vld [vmem:[#allocation2 + $0xc1] sm:$0xff] }
 0x239   : > { %v3570_v3 = vsel %vm1782_vm5, %v3377_v35, %v1204_v58  ;;  %v1703_v35 = vsel %vm1683_vm2, %v1670_v53, %v4358_v27  ;;  %v1734_v58 = vsel %vm1716_vm3, %v1701_v46, %v3227_v56  ;;  %v4360_v46 = vld [vmem:[#allocation19_spill] sm:$0xff] }
 0x23a   : > { %v1736_v61 = vsel %vm1716_vm3, %v1703_v35, %v3199_v47  ;;  %v1767_v24 = vsel %vm1749_vm4, %v1734_v58, %v3323_v38  ;;  %v607_v47 = vld [vmem:[#allocation2 + $0xc2] sm:$0xff]  ;;  %v4361_v35 = vld [vmem:[#allocation70_spill] sm:$0xff] }
 0x23b   : > { %v1769_v27 = vsel %vm1749_vm4, %v1736_v61, %v3398_v18  ;;  %v1671_v38 = vsel %vm217_vm0, %v4361_v35, %v4360_v46  ;;  %v4365_v46 = vld [vmem:[#allocation76_spill] sm:$0xff] }
 0x23c   : > { %1323 = vrot.lane.b32.xlu2 %v543_v59, %s2379_s11 }
 0x23d   : > { %1613 = vrot.lane.b32.xlu1 %v3383_v33, %s2381_s13 }
 0x23e   : > { %1355 = vrot.lane.b32.xlu0 %v4359_v63, %s2379_s11  ;;  %v1226_v59 = vpop.permute.xlu2 %1225  ;;  %v339_v63 = vld [vmem:[#allocation2 + $0x8] sm:$0xff] }
 0x23f   : > { %v3595_v28 = vsel %vm1782_vm5, %v3466_v52, %v1226_v59  ;;  %v1206_v33 = vpop.permute.xlu1 %1205  ;;  %v1704_v52 = vsel %vm1683_vm2, %v1671_v38, %v3117_v32 }
 0x240   : > { %v3600_v56 = vsel %vm1782_vm5, %v1767_v24, %v1206_v33  ;;  %v1210_v36 = vpop.permute.xlu0 %1209  ;;  %v1737_v18 = vsel %vm1716_vm3, %v1704_v52, %v3241_v60  ;;  %v542_v60 = vld [vmem:[#allocation2 + $0xb0] sm:$0xff] }
 0x241   : > { %v3603_v53 = vsel %vm1782_vm5, %v1769_v27, %v1210_v36  ;;  %v1770_v59 = vsel %vm1749_vm4, %v1737_v18, %v3335_v62  ;;  %v4362_v27 = vld [vmem:[#allocation12_spill] sm:$0xff] }
 0x242   : > { %v1652_v36 = vsel %vm217_vm0, %v339_v63, %v4362_v27  ;;  %v574_v27 = vld [vmem:[#allocation2 + $0xb1] sm:$0xff] }
 0x244   : > { %1483 = vrot.lane.b32.xlu2 %v3229_v57, %s2380_s12 }
 0x245   : > { %1451 = vrot.lane.b32.xlu1 %v575_v45, %s2380_s12  ;;  %v4363_v45 = vld [vmem:[#allocation59_spill] sm:$0xff] }
 0x246   : > { %1579 = vrot.lane.b32.xlu0 %v607_v47, %s2381_s13  ;;  %v1232_v58 = vpop.permute.xlu2 %1231  ;;  %v1685_v62 = vsel %vm1683_vm2, %v1652_v36, %v4363_v45  ;;  %v4364_v47 = vld [vmem:[#allocation23_spill] sm:$0xff] }
 0x247   : > { %v3620_v61 = vsel %vm1782_vm5, %v3493_v17, %v1232_v58  ;;  %v1212_v57 = vpop.permute.xlu1 %1211  ;;  %v1674_v17 = vsel %vm217_vm0, %v4365_v46, %v4364_v47  ;;  %v1718_v35 = vsel %vm1716_vm3, %v1685_v62, %v3127_v22  ;;  %v4366_v22 = vld [vmem:[#allocation88_spill] sm:$0xff]  ;;  %v4369_v36 = vld [vmem:[#allocation63_spill] sm:$0xff]  ;;  %v4371_v47 = vld [vmem:[#allocation82_spill] sm:$0xff] }
 0x248   : > { %v3623_v24 = vsel %vm1782_vm5, %v1770_v59, %v1212_v57  ;;  %v1216_v32 = vpop.permute.xlu0 %1215  ;;  %v1751_v38 = vsel %vm1749_vm4, %v1718_v35, %v3301_v13  ;;  %v4367_v57 = vld [vmem:[#allocation6_spill] sm:$0xff]  ;;  %v4370_v62 = vld [vmem:[#allocation28_spill] sm:$0xff] }
 0x249   : > { %v3627_v33 = vsel %vm1782_vm5, %v3426_v41, %v1216_v32  ;;  %v1707_v41 = vsel %vm1683_vm2, %v1674_v17, %v3129_v6  ;;  %v1784_v18 = vsel %vm1782_vm5, %v1751_v38, %v3504_v9  ;;  %v590_v9 = vld [vmem:[#allocation2 + $0x171] sm:$0xff]  ;;  %v1677_v46 = vsel %vm217_vm0, %v4371_v47, %v4370_v62 }
 0x24a   : > { %v1740_v52 = vsel %vm1716_vm3, %v1707_v41, %v3255_v50  ;;  %v4368_v32 = vld [vmem:[#allocation39_spill] sm:$0xff] }
 0x24b   : > { %v1773_v63 = vsel %vm1749_vm4, %v1740_v52, %v3350_v15  ;;  %v606_v45 = vld [vmem:[#allocation2 + $0xb2] sm:$0xff] }
 0x24c   : > { %1321 = vrot.lane.b32.xlu2 %v542_v60, %s2379_s11  ;;  %v1655_v60 = vsel %vm217_vm0, %v4368_v32, %v4367_v57  ;;  %v557_v57 = vld [vmem:[#allocation2 + $0x168] sm:$0xff]  ;;  %v4374_v32 = vld [vmem:[#allocation34_spill] sm:$0xff] }
 0x24d   : > { %1611 = vrot.lane.b32.xlu1 %v3381_v14, %s2381_s13  ;;  %v1688_v15 = vsel %vm1683_vm2, %v1655_v60, %v4369_v36  ;;  %v4375_v60 = vld [vmem:[#allocation87_spill] sm:$0xff] }
 0x24e   : > { %1353 = vrot.lane.b32.xlu0 %v4366_v22, %s2379_s11  ;;  %v1302_v58 = vpop.permute.xlu2 %1301  ;;  %v1721_v17 = vsel %vm1716_vm3, %v1688_v15, %v3139_v4 }
 0x24f   : > { %v3654_v6 = vsel %vm1815_vm6, %v1784_v18, %v1302_v58  ;;  %v1218_v13 = vpop.permute.xlu1 %1217  ;;  %v1754_v35 = vsel %vm1749_vm4, %v1721_v17, %v3313_v20 }
 0x250   : > { %v3657_v59 = vsel %vm1782_vm5, %v1773_v63, %v1218_v13  ;;  %v1222_v14 = vpop.permute.xlu0 %1221  ;;  %v1787_v38 = vsel %vm1782_vm5, %v1754_v35, %v3513_v8  ;;  %v541_v63 = vld [vmem:[#allocation2 + $0xa8] sm:$0xff]  ;;  %v4376_v35 = vld [vmem:[#allocation8_spill] sm:$0xff] }
 0x251   : > { %v3661_v50 = vsel %vm1782_vm5, %v3463_v16, %v1222_v14  ;;  %v1710_v16 = vsel %vm1683_vm2, %v1677_v46, %v3141_v5  ;;  %v4372_v8 = vld [vmem:[#allocation17_spill] sm:$0xff]  ;;  %v622_v14 = vld [vmem:[#allocation2 + $0x172] sm:$0xff]  ;;  %v338_v46 = vld [vmem:[#allocation2] sm:$0xff] }
 0x252   : > { %v1743_v41 = vsel %vm1716_vm3, %v1710_v16, %v3267_v1  ;;  %v1658_v13 = vsel %vm217_vm0, %v4333_v31, %v4372_v8  ;;  %v573_v16 = vld [vmem:[#allocation2 + $0xa9] sm:$0xff] }
 0x253   : > { %v1776_v4 = vsel %vm1749_vm4, %v1743_v41, %v3372_v39  ;;  %v605_v41 = vld [vmem:[#allocation2 + $0xaa] sm:$0xff] }
 0x254   : > { %1481 = vrot.lane.b32.xlu2 %v590_v9, %s2380_s12  ;;  %v4373_v9 = vld [vmem:[#allocation68_spill] sm:$0xff] }
 0x255   : > { %1449 = vrot.lane.b32.xlu1 %v574_v27, %s2380_s12  ;;  %v1691_v39 = vsel %vm1683_vm2, %v1658_v13, %v4373_v9  ;;  %v1680_v27 = vsel %vm217_vm0, %v4375_v60, %v4374_v32 }
 0x256   : > { %1577 = vrot.lane.b32.xlu0 %v606_v45, %s2381_s13  ;;  %v1308_v52 = vpop.permute.xlu2 %1307  ;;  %v1724_v36 = vsel %vm1716_vm3, %v1691_v39, %v3151_v19 }
 0x257   : > { %v3687_v18 = vsel %vm1815_vm6, %v1787_v38, %v1308_v52  ;;  %v1224_v5 = vpop.permute.xlu1 %1223  ;;  %v1757_v31 = vsel %vm1749_vm4, %v1724_v36, %v3325_v29  ;;  %v4377_v38 = vld [vmem:[#allocation10_spill] sm:$0xff] }
 0x258   : > { %v3690_v20 = vsel %vm1782_vm5, %v1776_v4, %v1224_v5  ;;  %v1228_v58 = vpop.permute.xlu0 %1227  ;;  %v1790_v45 = vsel %vm1782_vm5, %v1757_v31, %v3525_v23  ;;  %v1651_v23 = vsel %vm217_vm0, %v338_v46, %v4376_v35  ;;  %v4378_v52 = vld [vmem:[#allocation38_spill] sm:$0xff]  ;;  %v4379_v4 = vld [vmem:[#allocation40_spill] sm:$0xff]  ;;  %v4381_v31 = vld [vmem:[#allocation7_spill] sm:$0xff] }
 0x259   : > { %v3694_v1 = vsel %vm1782_vm5, %v3490_v43, %v1228_v58  ;;  %v1713_v43 = vsel %vm1683_vm2, %v1680_v27, %v3153_v21  ;;  %v1684_v5 = vsel %vm1683_vm2, %v1651_v23, %v4379_v4  ;;  %v4380_v58 = vld [vmem:[#allocation62_spill] sm:$0xff]  ;;  %v556_v27 = vld [vmem:[#allocation2 + $0x158] sm:$0xff] }
 0x25a   : > { %v1746_v15 = vsel %vm1716_vm3, %v1713_v43, %v3279_v7  ;;  %v589_v7 = vld [vmem:[#allocation2 + $0x169] sm:$0xff]  ;;  %v1717_v8 = vsel %vm1716_vm3, %v1684_v5, %v3165_v30  ;;  %v572_v43 = vld [vmem:[#allocation2 + $0x99] sm:$0xff] }
 0x25b   : > { %v1779_v19 = vsel %vm1749_vm4, %v1746_v15, %v3394_v49  ;;  %v1653_v49 = vsel %vm217_vm0, %v4378_v52, %v4377_v38  ;;  %v621_v36 = vld [vmem:[#allocation2 + $0x16a] sm:$0xff]  ;;  %v4382_v15 = vld [vmem:[#allocation44_spill] sm:$0xff]  ;;  %v4385_v38 = vld [vmem:[#allocation15_spill] sm:$0xff] }
 0x25c   : > { %1319 = vrot.lane.b32.xlu2 %v541_v63, %s2379_s11  ;;  %v1686_v63 = vsel %vm1683_vm2, %v1653_v49, %v4380_v58  ;;  %v4386_v52 = vld [vmem:[#allocation43_spill] sm:$0xff]  ;;  %v4387_v5 = vld [vmem:[#allocation9_spill] sm:$0xff]  ;;  %v4388_v58 = vld [vmem:[#allocation50_spill] sm:$0xff] }
 0x25d   : > { %1609 = vrot.lane.b32.xlu1 %v622_v14, %s2381_s13  ;;  %v1719_v13 = vsel %vm1716_vm3, %v1686_v63, %v3167_v34  ;;  %v1750_v14 = vsel %vm1749_vm4, %v1717_v8, %v3291_v11  ;;  %v1657_v49 = vsel %vm217_vm0, %v4386_v52, %v4385_v38  ;;  %v620_v4 = vld [vmem:[#allocation2 + $0x15a] sm:$0xff]  ;;  %v1659_v63 = vsel %vm217_vm0, %v4388_v58, %v4387_v5 }
 0x25e   : > { %1351 = vrot.lane.b32.xlu0 %v557_v57, %s2379_s11  ;;  %v1314_v62 = vpop.permute.xlu2 %1313  ;;  %v1752_v39 = vsel %vm1749_vm4, %v1719_v13, %v3263_v2  ;;  %v1783_v57 = vsel %vm1782_vm5, %v1750_v14, %v3417_v37  ;;  %v1656_v2 = vsel %vm217_vm0, %v4382_v15, %v4381_v31  ;;  %v4383_v37 = vld [vmem:[#allocation67_spill] sm:$0xff]  ;;  %v4391_v14 = vld [vmem:[#allocation96_spill] sm:$0xff] }
 0x25f   : > { %v3720_v47 = vsel %vm1815_vm6, %v1790_v45, %v1314_v62  ;;  %v1230_v21 = vpop.permute.xlu1 %1229  ;;  %v1785_v30 = vsel %vm1782_vm5, %v1752_v39, %v3511_v42  ;;  %v1689_v45 = vsel %vm1683_vm2, %v1656_v2, %v4383_v37  ;;  %v4398_v38 = vld [vmem:[#allocation108_spill] sm:$0xff] }
 0x260   : > { %v3723_v29 = vsel %vm1782_vm5, %v1779_v19, %v1230_v21  ;;  %v3725_v17 = vpop.permute.xlu0 %1233  ;;  %v1722_v42 = vsel %vm1716_vm3, %v1689_v45, %v3179_v40  ;;  %v4384_v19 = vld [vmem:[#allocation103_spill] sm:$0xff] }
 0x261   : > { %v1755_v21 = vsel %vm1749_vm4, %v1722_v42, %v4384_v19  ;;  %v604_v40 = vld [vmem:[#allocation2 + $0x9a] sm:$0xff]  ;;  %v571_v19 = vld [vmem:[#allocation2 + $0x91] sm:$0xff] }
 0x264   : > { %1479 = vrot.lane.b32.xlu2 %v589_v7, %s2380_s12  ;;  %v1788_v7 = vsel %vm1782_vm5, %v1755_v21, %v3523_v48  ;;  %v4389_v48 = vld [vmem:[#allocation52_spill] sm:$0xff]  ;;  %v555_v21 = vld [vmem:[#allocation2 + $0x150] sm:$0xff] }
 0x265   : > { %1447 = vrot.lane.b32.xlu1 %v573_v16, %s2380_s12  ;;  %v1690_v8 = vsel %vm1683_vm2, %v1657_v49, %v4389_v48  ;;  %v619_v48 = vld [vmem:[#allocation2 + $0x152] sm:$0xff] }
 0x266   : > { %1575 = vrot.lane.b32.xlu0 %v605_v41, %s2381_s13  ;;  %v3745_v9 = vpop.permute.xlu2 %1329  ;;  %v588_v41 = vld [vmem:[#allocation2 + $0x159] sm:$0xff]  ;;  %v1723_v39 = vsel %vm1716_vm3, %v1690_v8, %v4391_v14  ;;  %v4400_v14 = vld [vmem:[#allocation58_spill] sm:$0xff] }
 0x267   : > { %v1300_v32 = vpop.permute.xlu1 %1299  ;;  %v603_v8 = vld [vmem:[#allocation2 + $0x92] sm:$0xff] }
 0x268   : > { %v3754_v60 = vsel %vm1815_vm6, %v1783_v57, %v1300_v32  ;;  %v1304_v34 = vpop.permute.xlu0 %1303  ;;  %v4392_v57 = vld [vmem:[#allocation97_spill] sm:$0xff] }
 0x269   : > { %v3757_v11 = vsel %vm1815_vm6, %v1785_v30, %v1304_v34  ;;  %v4393_v30 = vld [vmem:[#allocation107_spill] sm:$0xff] }
 0x26a   : > { %v1756_v34 = vsel %vm1749_vm4, %v1723_v39, %v4393_v30  ;;  %v1682_v39 = vsel %vm217_vm0, %v4366_v22, %v4400_v14  ;;  %v4404_v22 = vld [vmem:[#allocation60_spill] sm:$0xff] }
 0x26b   : > { %v1789_v31 = vsel %vm1782_vm5, %v1756_v34, %v3481_v25  ;;  %v4402_v34 = vld [vmem:[#allocation93_spill] sm:$0xff] }
 0x26c   : > { %1349 = vrot.lane.b32.xlu2 %v556_v27, %s2379_s11 }
 0x26d   : > { %1607 = vrot.lane.b32.xlu1 %v621_v36, %s2381_s13  ;;  %v4394_v36 = vld [vmem:[#allocation104_spill] sm:$0xff] }
 0x26e   : > { %1445 = vrot.lane.b32.xlu0 %v572_v43, %s2380_s12  ;;  %v3769_v62 = vpop.permute.xlu2 %1489 }
 0x26f   : > { %v1306_v46 = vpop.permute.xlu1 %1305 }
 0x270   : > { %v3777_v16 = vsel %vm1815_vm6, %v3458_v44, %v1306_v46  ;;  %v1310_v35 = vpop.permute.xlu0 %1309  ;;  %v4390_v44 = vld [vmem:[#allocation73_spill] sm:$0xff]  ;;  %v4395_v46 = vld [vmem:[#allocation18_spill] sm:$0xff] }
 0x271   : > { %v3780_v23 = vsel %vm1815_vm6, %v1788_v7, %v1310_v35  ;;  %v1692_v13 = vsel %vm1683_vm2, %v1659_v63, %v4390_v44  ;;  %v1660_v7 = vsel %vm217_vm0, %v4336_v26, %v4395_v46  ;;  %v587_v35 = vld [vmem:[#allocation2 + $0x151] sm:$0xff]  ;;  %v554_v44 = vld [vmem:[#allocation2 + $0x140] sm:$0xff] }
 0x272   : > { %v1725_v32 = vsel %vm1716_vm3, %v1692_v13, %v4392_v57  ;;  %v4401_v57 = vld [vmem:[#allocation32_spill] sm:$0xff] }
 0x273   : > { %v1758_v43 = vsel %vm1749_vm4, %v1725_v32, %v4394_v36  ;;  %v1831_v32 = vsel %vm1815_vm6, %v4401_v57, %v3745_v9  ;;  %v1715_v36 = vsel %vm1683_vm2, %v1682_v39, %v4402_v34  ;;  %v570_v9 = vld [vmem:[#allocation2 + $0x81] sm:$0xff] }
 0x274   : > { %1573 = vrot.lane.b32.xlu2 %v604_v40, %s2381_s13  ;;  %v1791_v2 = vsel %vm1782_vm5, %v1758_v43, %v3542_v51  ;;  %v4396_v40 = vld [vmem:[#allocation57_spill] sm:$0xff]  ;;  %v4397_v51 = vld [vmem:[#allocation98_spill] sm:$0xff] }
 0x275   : > { %1477 = vrot.lane.b32.xlu1 %v588_v41, %s2380_s12  ;;  %v1693_v25 = vsel %vm1683_vm2, %v1660_v7, %v4396_v40  ;;  %v602_v7 = vld [vmem:[#allocation2 + $0x82] sm:$0xff] }
 0x276   : > { %1605 = vrot.lane.b32.xlu0 %v620_v4, %s2381_s13  ;;  %v3801_v27 = vpop.permute.xlu2 %1327  ;;  %v1726_v41 = vsel %vm1716_vm3, %v1693_v25, %v4397_v51  ;;  %v4399_v4 = vld [vmem:[#allocation25_spill] sm:$0xff] }
 0x277   : > { %v1312_v15 = vpop.permute.xlu1 %1311  ;;  %v1759_v52 = vsel %vm1749_vm4, %v1726_v41, %v4398_v38 }
 0x278   : > { %v3810_v37 = vsel %vm1815_vm6, %v1789_v31, %v1312_v15  ;;  %v1316_v45 = vpop.permute.xlu0 %1315  ;;  %v1792_v26 = vsel %vm1782_vm5, %v1759_v52, %v4399_v4  ;;  %v4403_v15 = vld [vmem:[#allocation102_spill] sm:$0xff]  ;;  %v2304_v52 = vld [vmem:[#allocation2 + $0xa8] sm:$0xff] }
 0x279   : > { %v3813_v42 = vsel %vm1815_vm6, %v1791_v2, %v1316_v45  ;;  %v1748_v2 = vsel %vm1716_vm3, %v1715_v36, %v4403_v15  ;;  %v4405_v4 = vld [vmem:[#allocation13_spill] sm:$0xff]  ;;  %v601_v15 = vld [vmem:[#allocation2 + $0x7a] sm:$0xff] }
 0x27c   : > { %1443 = vrot.lane.b32.xlu2 %v571_v19, %s2380_s12  ;;  %v586_v19 = vld [vmem:[#allocation2 + $0x141] sm:$0xff] }
 0x27d   : > { %1347 = vrot.lane.b32.xlu1 %v555_v21, %s2379_s11  ;;  %v1781_v21 = vsel %vm1749_vm4, %v1748_v2, %v4404_v22  ;;  %v585_v2 = vld [vmem:[#allocation2 + $0x139] sm:$0xff] }
 0x27e   : > { %1475 = vrot.lane.b32.xlu0 %v587_v35, %s2380_s12  ;;  %v3827_v49 = vpop.permute.xlu2 %1487  ;;  %v1814_v46 = vsel %vm1782_vm5, %v1781_v21, %v3725_v17  ;;  %v553_v17 = vld [vmem:[#allocation2 + $0x138] sm:$0xff] }
 0x27f   : > { %v1318_v5 = vpop.permute.xlu1 %1317 }
 0x280   : > { %v3832_v58 = vsel %vm1815_vm6, %v1792_v26, %v1318_v5  ;;  %v1362_v63 = vpop.permute.xlu0 %1361  ;;  %v1665_v26 = vsel %vm217_vm0, %v2304_v52, %v4405_v4  ;;  %v618_v5 = vld [vmem:[#allocation2 + $0x142] sm:$0xff] }
 0x281   : > { %v1847_v35 = vsel %vm1815_vm6, %v1814_v46, %v1362_v63  ;;  %v4406_v63 = vld [vmem:[#allocation85_spill] sm:$0xff] }
 0x282   : > { %v1880_v51 = vsel %vm1848_vm8, %v1847_v35, %v3769_v62  ;;  %v4408_v62 = vld [vmem:[#allocation106_spill] sm:$0xff] }
 0x283   : > { %v568_v46 = vld [vmem:[#allocation2 + $0x69] sm:$0xff] }
 0x284   : > { %1603 = vrot.lane.b32.xlu2 %v619_v48, %s2381_s13  ;;  %v1698_v48 = vsel %vm1683_vm2, %v1665_v26, %v4406_v63 }
 0x285   : > { %1571 = vrot.lane.b32.xlu1 %v603_v8, %s2381_s13  ;;  %v569_v8 = vld [vmem:[#allocation2 + $0x79] sm:$0xff] }
 0x286   : > { %1345 = vrot.lane.b32.xlu0 %v554_v44, %s2379_s11  ;;  %v3837_v13 = vpop.permute.xlu2 %1325  ;;  %v4407_v44 = vld [vmem:[#allocation101_spill] sm:$0xff] }
 0x287   : > { %v1458_v30 = vpop.permute.xlu1 %1457  ;;  %v1731_v14 = vsel %vm1716_vm3, %v1698_v48, %v4407_v44 }
 0x288   : > { %v1864_v43 = vsel %vm1848_vm8, %v1831_v32, %v1458_v30  ;;  %v1586_v31 = vpop.permute.xlu0 %1585  ;;  %v1764_v39 = vsel %vm1749_vm4, %v1731_v14, %v4408_v62  ;;  %v616_v62 = vld [vmem:[#allocation2 + $0x12a] sm:$0xff] }
 0x289   : > { %v1897_v45 = vsel %vm1881_vm7, %v1864_v43, %v1586_v31  ;;  %v1797_v57 = vsel %vm1782_vm5, %v1764_v39, %v3566_v0  ;;  %v600_v39 = vld [vmem:[#allocation2 + $0x6a] sm:$0xff] }
 0x28a   : > { %2215 = vmatpush.xpose.msk.msra.mxu0 %vm1915_vm9, %v1897_v45  ;;  %v1830_v30 = vsel %vm1815_vm6, %v1797_v57, %v3801_v27  ;;  %v617_v45 = vld [vmem:[#allocation2 + $0x13a] sm:$0xff] }
 0x28b   : > { %v551_v57 = vld [vmem:[#allocation2 + $0x120] sm:$0xff] }
 0x28c   : > { %1473 = vrot.lane.b32.xlu2 %v586_v19, %s2380_s12 }
 0x28d   : > { %1441 = vrot.lane.b32.xlu1 %v570_v9, %s2380_s12 }
 0x28e   : > { %1569 = vrot.lane.b32.xlu0 %v602_v7, %s2381_s13  ;;  %v3860_v40 = vpop.permute.xlu2 %1485  ;;  %v2305_v7 = vld [vmem:[#allocation2 + $0x98] sm:$0xff] }
 0x28f   : > { %v1618_v25 = vpop.permute.xlu1 %1617 }
 0x290   : > { %v1360_v41 = vpop.permute.xlu0 %1359  ;;  %v1913_v38 = vsel %vm1881_vm7, %v1880_v51, %v1618_v25  ;;  %v552_v25 = vld [vmem:[#allocation2 + $0x128] sm:$0xff]  ;;  %v4410_v51 = vld [vmem:[#allocation80_spill] sm:$0xff] }
 0x291   : > { %2232 = vmatpush.xpose.msk.msra.mxu1 %vm1915_vm9, %v1913_v38  ;;  %v1846_v0 = vsel %vm1815_vm6, %v3620_v61, %v1360_v41  ;;  %v4409_v61 = vld [vmem:[#allocation24_spill] sm:$0xff]  ;;  %v584_v38 = vld [vmem:[#allocation2 + $0x129] sm:$0xff] }
 0x292   : > { %v1879_v22 = vsel %vm1848_vm8, %v1846_v0, %v3827_v49  ;;  %v1664_v35 = vsel %vm217_vm0, %v2305_v7, %v4409_v61  ;;  %v4412_v49 = vld [vmem:[#allocation22_spill] sm:$0xff]  ;;  %v4414_v0 = vld [vmem:[#allocation61_spill] sm:$0xff] }
 0x293   : > { %v1697_v41 = vsel %vm1683_vm2, %v1664_v35, %v4410_v51  ;;  %v4417_v7 = vld [vmem:[#allocation26_spill] sm:$0xff] }
 0x294   : > { %1343 = vrot.lane.b32.xlu2 %v553_v17, %s2379_s11  ;;  %v4411_v17 = vld [vmem:[#allocation95_spill] sm:$0xff] }
 0x295   : > { %1601 = vrot.lane.b32.xlu1 %v618_v5, %s2381_s13  ;;  %v1730_v52 = vsel %vm1716_vm3, %v1697_v41, %v4411_v17 }
 0x296   : > { %1439 = vrot.lane.b32.xlu0 %v569_v8, %s2380_s12  ;;  %v3879_v32 = vpop.permute.xlu2 %1323  ;;  %v1763_v4 = vsel %vm1749_vm4, %v1730_v52, %v4412_v49  ;;  %v550_v52 = vld [vmem:[#allocation2 + $0x110] sm:$0xff]  ;;  %v615_v49 = vld [vmem:[#allocation2 + $0x122] sm:$0xff] }
 0x297   : > { %v1456_v34 = vpop.permute.xlu1 %1455  ;;  %v1796_v26 = vsel %vm1782_vm5, %v1763_v4, %v3556_v12  ;;  %v566_v4 = vld [vmem:[#allocation2 + $0x51] sm:$0xff] }
 0x298   : > { %v1863_v36 = vsel %vm1848_vm8, %v1830_v30, %v1456_v34  ;;  %v1584_v43 = vpop.permute.xlu0 %1583  ;;  %v1829_v63 = vsel %vm1815_vm6, %v1796_v26, %v3837_v13 }
 0x299   : > { %v1896_v31 = vsel %vm1881_vm7, %v1863_v36, %v1584_v43 }
 0x29a   : > { %2216 = vmatpush.xpose.msk.msra.mxu0 %vm1915_vm9, %v1896_v31  ;;  %v583_v31 = vld [vmem:[#allocation2 + $0x121] sm:$0xff] }
 0x29c   : > { %1567 = vrot.lane.b32.xlu2 %v601_v15, %s2381_s13  ;;  %v2306_v15 = vld [vmem:[#allocation2 + $0x90] sm:$0xff] }
 0x29d   : > { %1471 = vrot.lane.b32.xlu1 %v585_v2, %s2380_s12 }
 0x29e   : > { %1599 = vrot.lane.b32.xlu0 %v617_v45, %s2381_s13  ;;  %v3891_v27 = vpop.permute.xlu2 %1483  ;;  %v567_v45 = vld [vmem:[#allocation2 + $0x61] sm:$0xff] }
 0x29f   : > { %v1616_v19 = vpop.permute.xlu1 %1615 }
 0x2a0   : > { %v1358_v21 = vpop.permute.xlu0 %1357  ;;  %v1912_v9 = vsel %vm1881_vm7, %v1879_v22, %v1616_v19  ;;  %v599_v22 = vld [vmem:[#allocation2 + $0x62] sm:$0xff] }
 0x2a1   : > { %2233 = vmatpush.xpose.msk.msra.mxu1 %vm1915_vm9, %v1912_v9  ;;  %v1845_v12 = vsel %vm1815_vm6, %v3723_v29, %v1358_v21  ;;  %v4413_v29 = vld [vmem:[#allocation21_spill] sm:$0xff]  ;;  %v4415_v21 = vld [vmem:[#allocation100_spill] sm:$0xff] }
 0x2a2   : > { %v1878_v34 = vsel %vm1848_vm8, %v1845_v12, %v3860_v40  ;;  %v1663_v2 = vsel %vm217_vm0, %v2306_v15, %v4413_v29  ;;  %v4416_v40 = vld [vmem:[#allocation110_spill] sm:$0xff]  ;;  %v4419_v12 = vld [vmem:[#allocation79_spill] sm:$0xff] }
 0x2a3   : > { %v1696_v19 = vsel %vm1683_vm2, %v1663_v2, %v4414_v0 }
 0x2a4   : > { %1437 = vrot.lane.b32.xlu2 %v568_v46, %s2380_s12  ;;  %v1729_v9 = vsel %vm1716_vm3, %v1696_v19, %v4415_v21  ;;  %v565_v21 = vld [vmem:[#allocation2 + $0x49] sm:$0xff] }
 0x2a5   : > { %1341 = vrot.lane.b32.xlu1 %v552_v25, %s2379_s11  ;;  %v1762_v46 = vsel %vm1749_vm4, %v1729_v9, %v4416_v40  ;;  %v549_v9 = vld [vmem:[#allocation2 + $0x108] sm:$0xff] }
 0x2a6   : > { %1469 = vrot.lane.b32.xlu0 %v584_v38, %s2380_s12  ;;  %v3910_v5 = vpop.permute.xlu2 %1321  ;;  %v1795_v61 = vsel %vm1782_vm5, %v1762_v46, %v4417_v7  ;;  %v581_v40 = vld [vmem:[#allocation2 + $0x109] sm:$0xff] }
 0x2a7   : > { %v1454_v48 = vpop.permute.xlu1 %1453  ;;  %v1828_v25 = vsel %vm1815_vm6, %v1795_v61, %v3879_v32 }
 0x2a8   : > { %v1862_v8 = vsel %vm1848_vm8, %v1829_v63, %v1454_v48  ;;  %v1582_v44 = vpop.permute.xlu0 %1581 }
 0x2a9   : > { %v1895_v14 = vsel %vm1881_vm7, %v1862_v8, %v1582_v44 }
 0x2aa   : > { %2217 = vmatpush.xpose.msk.msra.mxu0 %vm1915_vm9, %v1895_v14  ;;  %v598_v14 = vld [vmem:[#allocation2 + $0x52] sm:$0xff] }
 0x2ac   : > { %1597 = vrot.lane.b32.xlu2 %v616_v62, %s2381_s13  ;;  %v2307_v62 = vld [vmem:[#allocation2 + $0x80] sm:$0xff] }
 0x2ad   : > { %1565 = vrot.lane.b32.xlu1 %v600_v39, %s2381_s13 }
 0x2ae   : > { %1339 = vrot.lane.b32.xlu0 %v551_v57, %s2379_s11  ;;  %v3922_v13 = vpop.permute.xlu2 %1481  ;;  %v582_v57 = vld [vmem:[#allocation2 + $0x111] sm:$0xff] }
 0x2af   : > { %v1614_v30 = vpop.permute.xlu1 %1613 }
 0x2b0   : > { %v1356_v36 = vpop.permute.xlu0 %1355  ;;  %v1911_v43 = vsel %vm1881_vm7, %v1878_v34, %v1614_v30  ;;  %v614_v34 = vld [vmem:[#allocation2 + $0x112] sm:$0xff] }
 0x2b1   : > { %2234 = vmatpush.xpose.msk.msra.mxu1 %vm1915_vm9, %v1911_v43  ;;  %v1844_v26 = vsel %vm1815_vm6, %v3694_v1, %v1356_v36  ;;  %v4418_v1 = vld [vmem:[#allocation11_spill] sm:$0xff] }
 0x2b2   : > { %v1877_v48 = vsel %vm1848_vm8, %v1844_v26, %v3891_v27  ;;  %v1662_v39 = vsel %vm217_vm0, %v2307_v62, %v4418_v1  ;;  %v4420_v36 = vld [vmem:[#allocation99_spill] sm:$0xff]  ;;  %v4421_v27 = vld [vmem:[#allocation105_spill] sm:$0xff]  ;;  %v4424_v26 = vld [vmem:[#allocation94_spill] sm:$0xff] }
 0x2b3   : > { %v1695_v30 = vsel %vm1683_vm2, %v1662_v39, %v4419_v12  ;;  %v580_v12 = vld [vmem:[#allocation2 + $0xf9] sm:$0xff] }
 0x2b4   : > { %1467 = vrot.lane.b32.xlu2 %v583_v31, %s2380_s12  ;;  %v1728_v43 = vsel %vm1716_vm3, %v1695_v30, %v4420_v36  ;;  %v564_v30 = vld [vmem:[#allocation2 + $0x39] sm:$0xff] }
 0x2b5   : > { %1435 = vrot.lane.b32.xlu1 %v567_v45, %s2380_s12  ;;  %v1761_v31 = vsel %vm1749_vm4, %v1728_v43, %v4421_v27 }
 0x2b6   : > { %1563 = vrot.lane.b32.xlu0 %v599_v22, %s2381_s13  ;;  %v3941_v35 = vpop.permute.xlu2 %1319  ;;  %v1794_v15 = vsel %vm1782_vm5, %v1761_v31, %v3554_v54 }
 0x2b7   : > { %v1452_v51 = vpop.permute.xlu1 %1451  ;;  %v1827_v2 = vsel %vm1815_vm6, %v1794_v15, %v3910_v5 }
 0x2b8   : > { %v1861_v41 = vsel %vm1848_vm8, %v1828_v25, %v1452_v51  ;;  %v1580_v38 = vpop.permute.xlu0 %1579  ;;  %v613_v51 = vld [vmem:[#allocation2 + $0x10a] sm:$0xff] }
 0x2b9   : > { %v1894_v17 = vsel %vm1881_vm7, %v1861_v41, %v1580_v38  ;;  %v2308_v41 = vld [vmem:[#allocation2 + $0x78] sm:$0xff]  ;;  %v4422_v38 = vld [vmem:[#allocation20_spill] sm:$0xff] }
 0x2ba   : > { %2218 = vmatpush.xpose.msk.msra.mxu0 %vm1915_vm9, %v1894_v17  ;;  %v597_v17 = vld [vmem:[#allocation2 + $0x4a] sm:$0xff] }
 0x2bc   : > { %1337 = vrot.lane.b32.xlu2 %v550_v52, %s2379_s11  ;;  %v4423_v52 = vld [vmem:[#allocation74_spill] sm:$0xff] }
 0x2bd   : > { %1595 = vrot.lane.b32.xlu1 %v615_v49, %s2381_s13 }
 0x2be   : > { %1433 = vrot.lane.b32.xlu0 %v566_v4, %s2380_s12  ;;  %v3953_v32 = vpop.permute.xlu2 %1479  ;;  %v548_v4 = vld [vmem:[#allocation2 + $0xf8] sm:$0xff] }
 0x2bf   : > { %v1612_v63 = vpop.permute.xlu1 %1611 }
 0x2c0   : > { %v1354_v8 = vpop.permute.xlu0 %1353  ;;  %v1910_v44 = vsel %vm1881_vm7, %v1877_v48, %v1612_v63 }
 0x2c1   : > { %2235 = vmatpush.xpose.msk.msra.mxu1 %vm1915_vm9, %v1910_v44  ;;  %v1843_v54 = vsel %vm1815_vm6, %v3595_v28, %v1354_v8  ;;  %v1661_v28 = vsel %vm217_vm0, %v2308_v41, %v4422_v38 }
 0x2c2   : > { %v1876_v7 = vsel %vm1848_vm8, %v1843_v54, %v3922_v13  ;;  %v1694_v49 = vsel %vm1683_vm2, %v1661_v28, %v4423_v52  ;;  %v4425_v13 = vld [vmem:[#allocation109_spill] sm:$0xff]  ;;  %v579_v54 = vld [vmem:[#allocation2 + $0xf1] sm:$0xff] }
 0x2c3   : > { %v1727_v63 = vsel %vm1716_vm3, %v1694_v49, %v4424_v26 }
 0x2c4   : > { %1561 = vrot.lane.b32.xlu2 %v598_v14, %s2381_s13  ;;  %v1760_v48 = vsel %vm1749_vm4, %v1727_v63, %v4425_v13 }
 0x2c5   : > { %1465 = vrot.lane.b32.xlu1 %v582_v57, %s2380_s12  ;;  %v1793_v8 = vsel %vm1782_vm5, %v1760_v48, %v3544_v55 }
 0x2c6   : > { %1593 = vrot.lane.b32.xlu0 %v614_v34, %s2381_s13  ;;  %v3972_v29 = vpop.permute.xlu2 %1349  ;;  %v1826_v14 = vsel %vm1815_vm6, %v1793_v8, %v3941_v35  ;;  %v596_v34 = vld [vmem:[#allocation2 + $0x3a] sm:$0xff] }
 0x2c7   : > { %v1450_v45 = vpop.permute.xlu1 %1449 }
 0x2c8   : > { %v1860_v0 = vsel %vm1848_vm8, %v1827_v2, %v1450_v45  ;;  %v1578_v19 = vpop.permute.xlu0 %1577  ;;  %v612_v45 = vld [vmem:[#allocation2 + $0xfa] sm:$0xff] }
 0x2c9   : > { %v1893_v22 = vsel %vm1881_vm7, %v1860_v0, %v1578_v19  ;;  %v563_v0 = vld [vmem:[#allocation2 + $0x31] sm:$0xff] }
 0x2ca   : > { %2219 = vmatpush.xpose.msk.msra.mxu0 %vm1915_vm9, %v1893_v22 }
 0x2cc   : > { %1431 = vrot.lane.b32.xlu2 %v565_v21, %s2380_s12 }
 0x2cd   : > { %1335 = vrot.lane.b32.xlu1 %v549_v9, %s2379_s11 }
 0x2ce   : > { %1463 = vrot.lane.b32.xlu0 %v581_v40, %s2380_s12  ;;  %v1574_v5 = vpop.permute.xlu2 %1573  ;;  %v595_v40 = vld [vmem:[#allocation2 + $0x32] sm:$0xff] }
 0x2cf   : > { %v1610_v46 = vpop.permute.xlu1 %1609 }
 0x2d0   : > { %v1352_v61 = vpop.permute.xlu0 %1351  ;;  %v1909_v25 = vsel %vm1881_vm7, %v1876_v7, %v1610_v46 }
 0x2d1   : > { %2236 = vmatpush.xpose.msk.msra.mxu1 %vm1915_vm9, %v1909_v25  ;;  %v1842_v55 = vsel %vm1815_vm6, %v3690_v20, %v1352_v61  ;;  %v547_v20 = vld [vmem:[#allocation2 + $0xf0] sm:$0xff] }
 0x2d2   : > { %v1875_v43 = vsel %vm1848_vm8, %v1842_v55, %v3953_v32 }
 0x2d4   : > { %1591 = vrot.lane.b32.xlu2 %v613_v51, %s2381_s13 }
 0x2d5   : > { %1559 = vrot.lane.b32.xlu1 %v597_v17, %s2381_s13 }
 0x2d6   : > { %1333 = vrot.lane.b32.xlu0 %v548_v4, %s2379_s11  ;;  %v1444_v44 = vpop.permute.xlu2 %1443 }
 0x2d7   : > { %v1448_v62 = vpop.permute.xlu1 %1447  ;;  %v1857_v41 = vsel %vm1848_vm8, %v3813_v42, %v1444_v44 }
 0x2d8   : > { %v1859_v1 = vsel %vm1848_vm8, %v1826_v14, %v1448_v62  ;;  %v1576_v39 = vpop.permute.xlu0 %1575 }
 0x2d9   : > { %v1892_v57 = vsel %vm1881_vm7, %v1859_v1, %v1576_v39 }
 0x2da   : > { %2220 = vmatpush.xpose.msk.msra.mxu0 %vm1915_vm9, %v1892_v57 }
 0x2dc   : > { %1461 = vrot.lane.b32.xlu2 %v580_v12, %s2380_s12 }
 0x2dd   : > { %1429 = vrot.lane.b32.xlu1 %v564_v30, %s2380_s12 }
 0x2de   : > { %1557 = vrot.lane.b32.xlu0 %v596_v34, %s2381_s13  ;;  %v1604_v35 = vpop.permute.xlu2 %1603 }
 0x2df   : > { %v1608_v36 = vpop.permute.xlu1 %1607 }
 0x2e0   : > { %v1446_v27 = vpop.permute.xlu0 %1445  ;;  %v1908_v31 = vsel %vm1881_vm7, %v1875_v43, %v1608_v36 }
 0x2e1   : > { %v1858_v15 = vsel %vm1848_vm8, %v3832_v58, %v1446_v27  ;;  %2237 = vmatpush.xpose.msk.msra.mxu1 %vm1915_vm9, %v1908_v31  ;;  %v1841_v58 = vsel %vm1815_vm6, %v3661_v50, %v3972_v29 }
 0x2e2   : > { %v1891_v2 = vsel %vm1881_vm7, %v1858_v15, %v1574_v5  ;;  %v611_v5 = vld [vmem:[#allocation2 + $0xf2] sm:$0xff] }
 0x2e3   : > { %2221 = vmatpush.xpose.msk.msra.mxu0 %vm1915_vm9, %v1891_v2 }
 0x2e4   : > { %1331 = vrot.lane.b32.xlu2 %v547_v20, %s2379_s11 }
 0x2e5   : > { %1589 = vrot.lane.b32.xlu1 %v612_v45, %s2381_s13 }
 0x2e6   : > { %1427 = vrot.lane.b32.xlu0 %v563_v0, %s2380_s12  ;;  %v1474_v32 = vpop.permute.xlu2 %1473 }
 0x2e7   : > { %v1478_v19 = vpop.permute.xlu1 %1477 }
 0x2e8   : > { %v1874_v22 = vsel %vm1848_vm8, %v1841_v58, %v1478_v19  ;;  %v1606_v21 = vpop.permute.xlu0 %1605 }
 0x2e9   : > { %v1907_v9 = vsel %vm1881_vm7, %v1874_v22, %v1606_v21 }
 0x2ea   : > { %2238 = vmatpush.xpose.msk.msra.mxu1 %vm1915_vm9, %v1907_v9 }
 0x2ec   : > { %1555 = vrot.lane.b32.xlu2 %v595_v40, %s2381_s13 }
 0x2ed   : > { %1459 = vrot.lane.b32.xlu1 %v579_v54, %s2380_s12 }
 0x2ee   : > { %1587 = vrot.lane.b32.xlu0 %v611_v5, %s2381_s13  ;;  %v1344_v46 = vpop.permute.xlu2 %1343  ;;  %s2329_s13 = scalar_lea.hbm %s4158_s2, 32 }
 0x2ef   : > { %v1348_v7 = vpop.permute.xlu1 %1347  ;;  %v1838_v62 = vsel %vm1815_vm6, %v3627_v33, %v1344_v46  ;;  %p2331_p1 = scmp.lt.s32.totalorder %s2329_s13, %s2325_s19 }
 0x2f0   : > { %v1840_v50 = vsel %vm1815_vm6, %v3564_v10, %v1348_v7  ;;  %v1476_v29 = vpop.permute.xlu0 %1475 }
 0x2f1   : > { %v1873_v61 = vsel %vm1848_vm8, %v1840_v50, %v1476_v29  ;;  %p2332_p2 = por %p2331_p1, %p2330_p0 }
 0x2f2   : > { %v1906_v25 = vsel %vm1881_vm7, %v1873_v61, %v1604_v35 }
 0x2f3   : > { %2239 = vmatpush.xpose.msk.msra.mxu1 %vm1915_vm9, %v1906_v25  ;;  %p2333_p3 = pnand %p2332_p2, %p2328_p13 }
 0x2f6   : > { %v1568_v51 = vpop.permute.xlu2 %1567 }
 0x2f7   : > { %v1572_v38 = vpop.permute.xlu1 %1571 }
 0x2f8   : > { %v1346_v28 = vpop.permute.xlu0 %1345  ;;  %v1890_v17 = vsel %vm1881_vm7, %v1857_v41, %v1572_v38 }
 0x2f9   : > { %2222 = vmatpush.xpose.msk.msra.mxu0 %vm1915_vm9, %v1890_v17  ;;  %v1839_v63 = vsel %vm1815_vm6, %v3657_v59, %v1346_v28 }
 0x2fa   : > { %v1872_v13 = vsel %vm1848_vm8, %v1839_v63, %v1474_v32 }
 0x2fe   : > { %v1438_v52 = vpop.permute.xlu2 %1437 }
 0x2ff   : > { %v1442_v49 = vpop.permute.xlu1 %1441  ;;  %v1854_v43 = vsel %vm1848_vm8, %v3780_v23, %v1438_v52 }
 0x300   : > { %v1856_v10 = vsel %vm1848_vm8, %v3720_v47, %v1442_v49  ;;  %v1570_v4 = vpop.permute.xlu0 %1569 }
 0x301   : > { %v1889_v26 = vsel %vm1881_vm7, %v1856_v10, %v1570_v4 }
 0x302   : > { %2223 = vmatpush.xpose.msk.msra.mxu0 %vm1915_vm9, %v1889_v26 }
 0x306   : > { %v1598_v44 = vpop.permute.xlu2 %1597 }
 0x307   : > { %v1602_v42 = vpop.permute.xlu1 %1601 }
 0x308   : > { %v1440_v48 = vpop.permute.xlu0 %1439  ;;  %v1905_v8 = vsel %vm1881_vm7, %v1872_v13, %v1602_v42 }
 0x309   : > { %v1855_v14 = vsel %vm1848_vm8, %v3810_v37, %v1440_v48  ;;  %2240 = vmatpush.xpose.msk.msra.mxu1 %vm1915_vm9, %v1905_v8  ;;  %v4426_v37 = vld [vmem:[#allocation27_spill] sm:$0xff] }
 0x30a   : > { %v1888_v47 = vsel %vm1881_vm7, %v1855_v14, %v1568_v51 }
 0x30b   : > { %2224 = vmatpush.xpose.msk.msra.mxu0 %vm1915_vm9, %v1888_v47 }
 0x30e   : > { %v1468_v12 = vpop.permute.xlu2 %1467 }
 0x30f   : > { %v1472_v59 = vpop.permute.xlu1 %1471 }
 0x310   : > { %v1871_v1 = vsel %vm1848_vm8, %v1838_v62, %v1472_v59  ;;  %v1600_v39 = vpop.permute.xlu0 %1599 }
 0x311   : > { %v1904_v57 = vsel %vm1881_vm7, %v1871_v1, %v1600_v39 }
 0x312   : > { %2241 = vmatpush.xpose.msk.msra.mxu1 %vm1915_vm9, %v1904_v57 }
 0x316   : > { %v1338_v33 = vpop.permute.xlu2 %1337 }
 0x317   : > { %v1342_v30 = vpop.permute.xlu1 %1341  ;;  %v1835_v54 = vsel %vm1815_vm6, %v3603_v53, %v1338_v33 }
 0x318   : > { %v1837_v34 = vsel %vm1815_vm6, %v4426_v37, %v1342_v30  ;;  %v1470_v55 = vpop.permute.xlu0 %1469 }
 0x319   : > { %v1870_v35 = vsel %vm1848_vm8, %v1837_v34, %v1470_v55 }
 0x31a   : > { %v1903_v36 = vsel %vm1881_vm7, %v1870_v35, %v1598_v44 }
 0x31b   : > { %2242 = vmatpush.xpose.msk.msra.mxu1 %vm1915_vm9, %v1903_v36 }
 0x31e   : > { %v1562_v20 = vpop.permute.xlu2 %1561 }
 0x31f   : > { %v1566_v27 = vpop.permute.xlu1 %1565 }
 0x320   : > { %v1340_v31 = vpop.permute.xlu0 %1339  ;;  %v1887_v15 = vsel %vm1881_vm7, %v1854_v43, %v1566_v27 }
 0x321   : > { %2225 = vmatpush.xpose.msk.msra.mxu0 %vm1915_vm9, %v1887_v15  ;;  %v1836_v58 = vsel %vm1815_vm6, %v3623_v24, %v1340_v31 }
 0x322   : > { %v1869_v19 = vsel %vm1848_vm8, %v1836_v58, %v1468_v12 }
 0x326   : > { %v1432_v9 = vpop.permute.xlu2 %1431 }
 0x327   : > { %v1436_v2 = vpop.permute.xlu1 %1435  ;;  %v1851_v38 = vsel %vm1848_vm8, %v3757_v11, %v1432_v9 }
 0x328   : > { %v1853_v45 = vsel %vm1848_vm8, %v3687_v18, %v1436_v2  ;;  %v1564_v0 = vpop.permute.xlu0 %1563 }
 0x329   : > { %v1886_v32 = vsel %vm1881_vm7, %v1853_v45, %v1564_v0 }
 0x32a   : > { %2226 = vmatpush.xpose.msk.msra.mxu0 %vm1915_vm9, %v1886_v32 }
 0x32e   : > { %v1592_v50 = vpop.permute.xlu2 %1591 }
 0x32f   : > { %v1596_v23 = vpop.permute.xlu1 %1595 }
 0x330   : > { %v1434_v22 = vpop.permute.xlu0 %1433  ;;  %v1902_v21 = vsel %vm1881_vm7, %v1869_v19, %v1596_v23 }
 0x331   : > { %v1852_v40 = vsel %vm1848_vm8, %v3777_v16, %v1434_v22  ;;  %2243 = vmatpush.xpose.msk.msra.mxu1 %vm1915_vm9, %v1902_v21  ;;  %v4427_v16 = vld [vmem:[#allocation29_spill] sm:$0xff] }
 0x332   : > { %v1885_v18 = vsel %vm1881_vm7, %v1852_v40, %v1562_v20 }
 0x333   : > { %2227 = vmatpush.xpose.msk.msra.mxu0 %vm1915_vm9, %v1885_v18 }
 0x336   : > { %v1462_v53 = vpop.permute.xlu2 %1461 }
 0x337   : > { %v1466_v24 = vpop.permute.xlu1 %1465 }
 0x338   : > { %v1868_v5 = vsel %vm1848_vm8, %v1835_v54, %v1466_v24  ;;  %v1594_v46 = vpop.permute.xlu0 %1593 }
 0x339   : > { %v1901_v7 = vsel %vm1881_vm7, %v1868_v5, %v1594_v46 }
 0x33a   : > { %2244 = vmatpush.xpose.msk.msra.mxu1 %vm1915_vm9, %v1901_v7 }
 0x33e   : > { %v1332_v49 = vpop.permute.xlu2 %1331 }
 0x33f   : > { %v1336_v29 = vpop.permute.xlu1 %1335  ;;  %v1832_v47 = vsel %vm1815_vm6, %v3570_v3, %v1332_v49 }
 0x340   : > { %v1834_v61 = vsel %vm1815_vm6, %v4427_v16, %v1336_v29  ;;  %v1464_v25 = vpop.permute.xlu0 %1463 }
 0x341   : > { %v1867_v51 = vsel %vm1848_vm8, %v1834_v61, %v1464_v25 }
 0x342   : > { %v1900_v41 = vsel %vm1881_vm7, %v1867_v51, %v1592_v50 }
 0x343   : > { %2245 = vmatpush.xpose.msk.msra.mxu1 %vm1915_vm9, %v1900_v41 }
 0x346   : > { %v1556_v48 = vpop.permute.xlu2 %1555 }
 0x347   : > { %v1560_v28 = vpop.permute.xlu1 %1559 }
 0x348   : > { %v1334_v17 = vpop.permute.xlu0 %1333  ;;  %v1884_v52 = vsel %vm1881_vm7, %v1851_v38, %v1560_v28 }
 0x349   : > { %2228 = vmatpush.xpose.msk.msra.mxu0 %vm1915_vm9, %v1884_v52  ;;  %v1833_v42 = vsel %vm1815_vm6, %v3600_v56, %v1334_v17  ;;  %v1914_v56 = vld [vmem:[%s4157_s1] sm:$0xff] }
 0x34a   : > { %v1866_v13 = vsel %vm1848_vm8, %v1833_v42, %v1462_v53 }
 0x34f   : > { %v1430_v10 = vpop.permute.xlu1 %1429 }
 0x350   : > { %v1850_v4 = vsel %vm1848_vm8, %v3654_v6, %v1430_v10  ;;  %v1558_v26 = vpop.permute.xlu0 %1557 }
 0x351   : > { %v1883_v63 = vsel %vm1881_vm7, %v1850_v4, %v1558_v26 }
 0x352   : > { %2229 = vmatpush.xpose.msk.msra.mxu0 %vm1915_vm9, %v1883_v63 }
 0x357   : > { %v1590_v11 = vpop.permute.xlu1 %1589 }
 0x358   : > { %v1428_v8 = vpop.permute.xlu0 %1427  ;;  %v1899_v44 = vsel %vm1881_vm7, %v1866_v13, %v1590_v11 }
 0x359   : > { %v1849_v6 = vsel %vm1848_vm8, %v3754_v60, %v1428_v8  ;;  %2246 = vmatpush.xpose.msk.msra.mxu1 %vm1915_vm9, %v1899_v44 }
 0x35a   : > { %v1882_v14 = vsel %vm1881_vm7, %v1849_v6, %v1556_v48 }
 0x35b   : > { %2230 = vmatpush.xpose.msk.msra.mxu0 %vm1915_vm9, %v1882_v14 }
 0x35e   : > { %2231 = vmatmul.msk.f32.vlgmr.msra.gmra.mxu0 %vm1915_vm9, %v1914_v56 }
 0x35f   : > { %v1460_v62 = vpop.permute.xlu1 %1459 }
 0x360   : > { %v1865_v59 = vsel %vm1848_vm8, %v1832_v47, %v1460_v62  ;;  %v1588_v1 = vpop.permute.xlu0 %1587 }
 0x361   : > { %v1898_v60 = vsel %vm1881_vm7, %v1865_v59, %v1588_v1 }
 0x362   : > { %2247 = vmatpush.xpose.msk.msra.mxu1 %vm1915_vm9, %v1898_v60 }
 0x365   : > { %2248 = vmatmul.msk.f32.vlgmr.msra.gmra.mxu1 %vm1915_vm9, %v1914_v56 }
 0x3db   : > { %v2032_v39 = vpop.f32.mrf.mxu0 }
 0x3dc   : > { %2055 = vst [vmem:[%s191_s6] sm:$0xff] %v2032_v39  ;;  %v2062_v3 = vmul.f32 %v2032_v39, %v2032_v39 }
 0x3e2   : > { %v2052_v57 = vpop.f32.mrf.mxu1 }
 0x3e3   : > { %2056 = vst [vmem:[%s191_s6 + $0x8] sm:$0xff] %v2052_v57  ;;  %v2057_v12 = vadd.f32 %v2052_v57, %v2032_v39  ;;  %v2063_v30 = vmul.f32 %v2052_v57, %v2052_v57 }
 0x3e4   : > { %2336 = shalt.err (!%p2333_p3)
}
 0x3e5   : > { %2256 = dma.vmem_to_hbm [thread:$0]  (%p2445_p5), %s2091_s7, 256, %s2093_s8, %s2069_s9   ;;  %v2064_v37 = vadd.f32 %v2063_v30, %v2062_v3  ;;  %2058 = vadd.xlane.f32.xlu1 %v2057_v12  ;;  %vm2060_vm10 = vcmask 7168  }
 0x3e6   : > { %s2213_s22 = sshll.u32 %s2506_s28, 3 }
 0x3e7   : > { %2065 = vadd.xlane.f32.xlu2 %v2064_v37  ;;  %s212_s29 = scalar_lea.vmem %s4159_s3, %s2213_s22  ;;  %s216_s6 = scalar_lea.vmem %s4160_s4, %s2213_s22 }
 0x458   : > { %v2059_v34 = vpop.xlane.xlu1 %2058 }
 0x459   : > { %2061 = vst.msk [vmem:[%s212_s29] sm:$0xff] %vm2060_vm10, %v2059_v34 }
 0x45a   : > { %v2066_v55 = vpop.xlane.xlu2 %2065 }
 0x45b   : > { %2067 = vst.msk [vmem:[%s216_s6] sm:$0xff] %vm2060_vm10, %v2066_v55 }
 0x45c PF: > { %p2262_p4 = scmp.ge.s32.totalorder %s2371_s18, 2  ;;  %s2110_s25 = sand.u32 1, %s2359_s15  }
 0x45d   : > { %s2111_s28 = scalar_lea.sflag [#allocation4], %s2110_s25 }
 0x45e   : > { %p2259_p5 = pnand %p2262_p4, %p2449_p6 }
 0x460   : > { %p2260_p7 = pneg %p2259_p5 }
 0x462   : > { %2354 = dma.done.wait (%p2260_p7), %s2111_s28, 256  }
 0x463   : > { %2356 = vsyncadd (%p2260_p7), %s2111_s28, 4294967040  ;;  %p15_p8 = scmp.ge.s32.totalorder %s2432_s21, 4   ;;  %s4428_s15 = smov %s2363_s16 }
 0x464   : > { %s4429_s16 = smov %s2367_s17  ;;  %s4430_s17 = smov %s2443_s24 }
 0x465   : > { %s4431_s18 = smov %s2432_s21  ;;  %17 = sbr.rel (!%p15_p8) target bundleno = 3 (0x3), region = 89 }
 0x46a   :  { %2131 = vsyncpa [#allocation4], 1 }
 0x46b   :  { %2133 = vsyncpa [#allocation4 + $0x1], 1 }

</bundles_post_ra>
